<compile_context>
chip_gen: v5e
topology: v5e:2x2
jax: 0.10.0
libtpu: 0.0.40
codegen_flags: <defaults>
</compile_context>

<pallas_src>
import functools

import jax
import jax.numpy as jnp
from jax.experimental import pallas as pl
from jax.experimental.pallas import tpu as pltpu


# ----------------------------------------------------------------------------
# Kernel
# ----------------------------------------------------------------------------
def _paca_kernel(x_ref,
                 g1pa_a_ref, g1pa_b_ref, b1p_ref, w2p_ref, b2p_ref,
                 g1ca_ref, b1c_ref, w2c_ref, b2c_ref,
                 out_ref, wt_ref, *, dim_pa, dim_ca):
    """One grid step: a (TB, W*C) lane-dense block of batch rows."""
    W, C = dim_pa, dim_ca
    n = W * C
    f32 = jnp.float32

    xb = x_ref[...].astype(f32)                       # (TB, n)

    # ---- CA pooled: full-wrap stride-C segmented max (direction free) -----
    # After the tree, EVERY lane j holds  max_w x[b, w, j % C].
    yc = xb
    s = C
    while s < n:
        yc = jnp.maximum(yc, pltpu.roll(yc, s, axis=1))
        s *= 2

    # ---- PA pooled: window-of-C max tree over the full width --------------
    # After the tree, lane w*C (or w*C + C - 1, depending on the hardware roll
    # direction) holds  max_c x[b, w, c].
    yp = xb
    s = 1
    while s < C:
        yp = jnp.maximum(yp, pltpu.roll(yp, s, axis=1))
        s *= 2

    # ---- roll-direction probe: pick the matching zero-padded gather -------
    lane = jax.lax.broadcasted_iota(jnp.int32, (1, 128), 1)
    r1 = pltpu.roll(lane, 1, axis=1)
    # rev == 1.0  iff roll fetches from LOWER lanes (jnp.roll semantics), in
    # which case the group max sits at lane w*C + C - 1 (use the "B" gather).
    rev = (r1[:, :1] > 1).astype(f32)                 # (1, 1)
    g1pa = g1pa_a_ref[...] + rev * (g1pa_b_ref[...] - g1pa_a_ref[...])

    # ---- PA / CA MLPs on the MXU; outputs already expanded to (TB, n) -----
    h_pa = jnp.maximum(
        jnp.dot(yp, g1pa, preferred_element_type=f32) + b1p_ref[...], 0.0)
    pa_full = jnp.dot(h_pa, w2p_ref[...],
                      preferred_element_type=f32) + b2p_ref[...]   # (TB, n)

    h_ca = jnp.maximum(
        jnp.dot(yc, g1ca_ref[...], preferred_element_type=f32) + b1c_ref[...],
        0.0)
    ca_full = jnp.dot(h_ca, w2c_ref[...],
                      preferred_element_type=f32) + b2c_ref[...]   # (TB, n)

    # ---- combine: two unmasked full-width stores ---------------------------
    wt = jax.nn.sigmoid(pa_full * ca_full)                          # (TB, n)
    out_ref[...] = (xb * wt).astype(out_ref.dtype)
    wt_ref[...] = wt.astype(wt_ref.dtype)


# ----------------------------------------------------------------------------
# Wrapper helpers
# ----------------------------------------------------------------------------
def _round_up(v, m):
    return ((v + m - 1) // m) * m


def _tpu_topology():
    """(vmem_capacity_bytes, tensorcores_per_chip) with safe fallbacks."""
    vmem_cap = 64 * 1024 * 1024          # conservative (v7x per-TC VMEM)
    try:
        info = pltpu.get_tpu_info()
        vmem_cap = int(getattr(info, "vmem_capacity_bytes", vmem_cap))
    except Exception:
        pass
    num_tc = 1
    try:
        kind = jax.devices()[0].device_kind.lower()
        if any(t in kind for t in ("v4", "v5p", "7")):
            num_tc = 2
    except Exception:
        pass
    return vmem_cap, num_tc


def _pick_batch_block(b, n, stream_itemsize_sum, vmem_budget_bytes, num_tc):
    """Rows per grid step: x + out + wt blocks, double-buffered."""
    bytes_per_row = 2 * n * stream_itemsize_sum
    cap = max(16, (vmem_budget_bytes // bytes_per_row) // 16 * 16)
    cap = min(cap, 512)          # 512-row blocks already sit near the roofline
    if b <= cap:
        if num_tc > 1 and b >= 32:
            # >= num_tc equal steps so every TensorCore gets work.
            return min(cap, _round_up(pl.cdiv(b, num_tc), 16))
        return b                 # single grid step on single-TC chips
    steps = pl.cdiv(b, cap)
    if num_tc > 1:
        steps = _round_up(steps, num_tc)
    return _round_up(pl.cdiv(b, steps), 16)


def _expand_params(p, W, C):
    """Fold pooled-value gather and per-group broadcasts into weight matrices."""
    n = W * C
    f32 = jnp.float32
    j = jnp.arange(n)
    grp = j // C          # group index w of flat lane j
    pos = j % C           # within-group position c of flat lane j

    w1p = p["w1_pa_T"].astype(f32)                       # (W, hid_pa)
    g1pa_a = w1p[grp] * (pos == 0).astype(f32)[:, None]      # gather group starts
    g1pa_b = w1p[grp] * (pos == C - 1).astype(f32)[:, None]  # gather group ends
    w2p = p["w2_pa_T"].astype(f32)[:, grp]               # (hid_pa, n)
    b2p = p["b2_pa"].astype(f32)[:, grp]                 # (1, n)

    w1c = p["w1_ca_T"].astype(f32)                       # (C, hid_ca)
    g1ca = w1c[pos] * (j < C).astype(f32)[:, None]       # gather first group only
    w2c = p["w2_ca_T"].astype(f32)[:, pos]               # (hid_ca, n)
    b2c = p["b2_ca"].astype(f32)[:, pos]                 # (1, n)

    return (g1pa_a, g1pa_b, p["b1_pa"].astype(f32), w2p, b2p,
            g1ca, p["b1_ca"].astype(f32), w2c, b2c)


# ----------------------------------------------------------------------------
# Public entry point
# ----------------------------------------------------------------------------
def paca_layer(x, params, *, weight_dtype=jnp.float32, vmem_budget_bytes=None):
    """x: (B, W, C) with W = dim_pa, C = dim_ca (both powers of two).

    Returns (out, paca_normal_weight), both (B, W, C).
    Set weight_dtype=jnp.bfloat16 to shave ~17% HBM writeback traffic (the
    returned weight then differs from the f32 reference beyond 1e-5).
    """
    B, W, C = x.shape
    if (W & (W - 1)) or (C & (C - 1)):
        # TODO(synk): roll-tree pooling assumes power-of-two dim_pa/dim_ca.
        raise NotImplementedError("paca_layer requires power-of-two W and C")
    n = W * C

    x2 = x.reshape(B, n)                    # free: row-major contiguous, native dtype
    wts = _expand_params(params, W, C)
    g1pa_a, g1pa_b, b1p, w2p, b2p, g1ca, b1c, w2c, b2c = wts
    hid_pa = g1pa_a.shape[1]
    hid_ca = g1ca.shape[1]

    x_sz = jnp.dtype(x.dtype).itemsize
    wt_sz = jnp.dtype(weight_dtype).itemsize
    stream_sz = 2 * x_sz + wt_sz            # x read + out write + wt write

    vmem_cap, num_tc = _tpu_topology()
    if vmem_budget_bytes is None:
        vmem_budget_bytes = min(int(vmem_cap * 0.6), 48 * 1024 * 1024)

    tb = _pick_batch_block(B, n, stream_sz, vmem_budget_bytes, num_tc)
    grid = (pl.cdiv(B, tb),)

    blocks_bytes = 2 * tb * n * stream_sz               # double-buffered blocks
    weights_bytes = sum(a.size * 4 for a in wts)
    vmem_limit = int(min(vmem_cap * 3 // 4,
                         max(16 * 1024 * 1024,
                             4 * blocks_bytes + 2 * weights_bytes
                             + 8 * 1024 * 1024)))

    row_spec = pl.BlockSpec((tb, n), lambda i: (i, 0))
    # Weights: full blocks, constant index_map -> fetched once, kept resident.
    full = lambda a: pl.BlockSpec(a.shape, lambda i: (0, 0))

    grid_spec = pltpu.PrefetchScalarGridSpec(
        num_scalar_prefetch=0,
        grid=grid,
        in_specs=[row_spec,
                  full(g1pa_a), full(g1pa_b), full(b1p), full(w2p), full(b2p),
                  full(g1ca), full(b1c), full(w2c), full(b2c)],
        out_specs=[row_spec, row_spec],
    )

    log_terms = max(W.bit_length() - 1, 0) + max(C.bit_length() - 1, 0)
    mxu_flops = 4 * B * n * (hid_pa + hid_ca)
    elt_flops = B * n * (2 * log_terms + 4)
    bytes_accessed = (B * n * (2 * x_sz + wt_sz)
                      + sum(a.size * 4 for a in wts))
    cost = pl.CostEstimate(flops=mxu_flops + elt_flops,
                           transcendentals=B * n,
                           bytes_accessed=int(bytes_accessed))

    out2, wt2 = pl.pallas_call(
        functools.partial(_paca_kernel, dim_pa=W, dim_ca=C),
        out_shape=(jax.ShapeDtypeStruct((B, n), x.dtype),
                   jax.ShapeDtypeStruct((B, n), weight_dtype)),
        grid_spec=grid_spec,
        compiler_params=pltpu.CompilerParams(
            dimension_semantics=("parallel",),
            vmem_limit_bytes=vmem_limit),
        cost_estimate=cost,
    )(x2, g1pa_a, g1pa_b, b1p, w2p, b2p, g1ca, b1c, w2c, b2c)

    return out2.reshape(B, W, C), wt2.reshape(B, W, C)


# ----------------------------------------------------------------------------
# Parameters & pure-JAX reference
# ----------------------------------------------------------------------------
def init_params(key, dim_ca, dim_pa, reduction_r):
    """Deterministic synthetic parameters matching PACALayer.__init__ shapes."""
    hid_pa = dim_pa // (dim_pa // reduction_r)
    hid_ca = dim_ca // (dim_ca // reduction_r)

    ks = jax.random.split(key, 8)
    s = 0.1
    # Stored pre-transposed so the reference computes  y @ W^T  as  y @ (stored).
    return {
        "w1_pa_T": (s * jax.random.normal(ks[0], (dim_pa, hid_pa))).astype(jnp.float32),
        "b1_pa":   (s * jax.random.normal(ks[1], (1, hid_pa))).astype(jnp.float32),
        "w2_pa_T": (s * jax.random.normal(ks[2], (hid_pa, dim_pa))).astype(jnp.float32),
        "b2_pa":   (s * jax.random.normal(ks[3], (1, dim_pa))).astype(jnp.float32),
        "w1_ca_T": (s * jax.random.normal(ks[4], (dim_ca, hid_ca))).astype(jnp.float32),
        "b1_ca":   (s * jax.random.normal(ks[5], (1, hid_ca))).astype(jnp.float32),
        "w2_ca_T": (s * jax.random.normal(ks[6], (hid_ca, dim_ca))).astype(jnp.float32),
        "b2_ca":   (s * jax.random.normal(ks[7], (1, dim_ca))).astype(jnp.float32),
    }


def paca_layer_ref(x, p):
    """Pure-JAX reference mirroring the PyTorch forward exactly."""
    B, W, C = x.shape
    y_pa = jnp.max(x, axis=2)                               # (B, W)
    h_pa = jax.nn.relu(y_pa @ p["w1_pa_T"] + p["b1_pa"])
    pa = (h_pa @ p["w2_pa_T"] + p["b2_pa"]).reshape(B, W, 1)
    y_ca = jnp.max(x, axis=1)                               # (B, C)
    h_ca = jax.nn.relu(y_ca @ p["w1_ca_T"] + p["b1_ca"])
    ca = (h_ca @ p["w2_ca_T"] + p["b2_ca"]).reshape(B, 1, C)
    w = jax.nn.sigmoid(pa * ca)
    return x * w, w


if __name__ == "__main__":
    key = jax.random.PRNGKey(0)
    k_x, k_p = jax.random.split(key)

    B, dim_pa, dim_ca, reduction_r = 2, 16, 32, 4   # x: (B, W=dim_pa, C=dim_ca)
    x = jax.random.normal(k_x, (B, dim_pa, dim_ca), dtype=jnp.float32)
    params = init_params(k_p, dim_ca, dim_pa, reduction_r)

    run = jax.jit(paca_layer)
    out, weight = run(x, params)
    jax.block_until_ready((out, weight))

    out_ref, weight_ref = paca_layer_ref(x, params)
    assert out.shape == (B, dim_pa, dim_ca) and weight.shape == (B, dim_pa, dim_ca)
    assert jnp.allclose(out, out_ref, atol=1e-5, rtol=1e-5)
    assert jnp.allclose(weight, weight_ref, atol=1e-5, rtol=1e-5)

    print("KERNEL_OK")
</pallas_src>

<mosaic_0001>
module attributes {stable_mosaic.version = 11 : i64} {
  func.func @_paca_kernel(%arg0: i32, %arg1: memref<2x512xf32, #tpu.memory_space<vmem>>, %arg2: memref<512x4xf32, #tpu.memory_space<vmem>>, %arg3: memref<512x4xf32, #tpu.memory_space<vmem>>, %arg4: memref<1x4xf32, #tpu.memory_space<vmem>>, %arg5: memref<4x512xf32, #tpu.memory_space<vmem>>, %arg6: memref<1x512xf32, #tpu.memory_space<vmem>>, %arg7: memref<512x4xf32, #tpu.memory_space<vmem>>, %arg8: memref<1x4xf32, #tpu.memory_space<vmem>>, %arg9: memref<4x512xf32, #tpu.memory_space<vmem>>, %arg10: memref<1x512xf32, #tpu.memory_space<vmem>>, %arg11: memref<2x512xf32, #tpu.memory_space<vmem>>, %arg12: memref<2x512xf32, #tpu.memory_space<vmem>>) attributes {dimension_semantics = [#tpu.dimension_semantics<parallel>], iteration_bounds = array<i64: 1>, scalar_prefetch = 0 : i64, scratch_operands = 0 : i64, tpu.core_type = #tpu.core_type<tc>, window_params = [{transform_indices = @transform_0, window_bounds = array<i64: 2, 512>}, {pipeline_mode = #tpu.pipeline_mode<synchronous>, transform_indices = @transform_1, window_bounds = array<i64: 512, 4>}, {pipeline_mode = #tpu.pipeline_mode<synchronous>, transform_indices = @transform_2, window_bounds = array<i64: 512, 4>}, {pipeline_mode = #tpu.pipeline_mode<synchronous>, transform_indices = @transform_3, window_bounds = array<i64: 1, 4>}, {pipeline_mode = #tpu.pipeline_mode<synchronous>, transform_indices = @transform_4, window_bounds = array<i64: 4, 512>}, {pipeline_mode = #tpu.pipeline_mode<synchronous>, transform_indices = @transform_5, window_bounds = array<i64: 1, 512>}, {pipeline_mode = #tpu.pipeline_mode<synchronous>, transform_indices = @transform_6, window_bounds = array<i64: 512, 4>}, {pipeline_mode = #tpu.pipeline_mode<synchronous>, transform_indices = @transform_7, window_bounds = array<i64: 1, 4>}, {pipeline_mode = #tpu.pipeline_mode<synchronous>, transform_indices = @transform_8, window_bounds = array<i64: 4, 512>}, {pipeline_mode = #tpu.pipeline_mode<synchronous>, transform_indices = @transform_9, window_bounds = array<i64: 1, 512>}, {transform_indices = @transform_10, window_bounds = array<i64: 2, 512>}, {transform_indices = @transform_11, window_bounds = array<i64: 2, 512>}]} {
    %c0 = arith.constant 0 : index
    %c0_0 = arith.constant 0 : index
    %0 = vector.load %arg1[%c0, %c0_0] : memref<2x512xf32, #tpu.memory_space<vmem>>, vector<2x512xf32>
    %c32_i32 = arith.constant 32 : i32
    %1 = tpu.dynamic_rotate %0 by %c32_i32 dim 1 : vector<2x512xf32>, i32 -> vector<2x512xf32>
    %2 = arith.maximumf %0, %1 : vector<2x512xf32>
    %c64_i32 = arith.constant 64 : i32
    %3 = tpu.dynamic_rotate %2 by %c64_i32 dim 1 : vector<2x512xf32>, i32 -> vector<2x512xf32>
    %4 = arith.maximumf %2, %3 : vector<2x512xf32>
    %c128_i32 = arith.constant 128 : i32
    %5 = tpu.dynamic_rotate %4 by %c128_i32 dim 1 : vector<2x512xf32>, i32 -> vector<2x512xf32>
    %6 = arith.maximumf %4, %5 : vector<2x512xf32>
    %c256_i32 = arith.constant 256 : i32
    %7 = tpu.dynamic_rotate %6 by %c256_i32 dim 1 : vector<2x512xf32>, i32 -> vector<2x512xf32>
    %8 = arith.maximumf %6, %7 : vector<2x512xf32>
    %c1_i32 = arith.constant 1 : i32
    %9 = tpu.dynamic_rotate %0 by %c1_i32 dim 1 : vector<2x512xf32>, i32 -> vector<2x512xf32>
    %10 = arith.maximumf %0, %9 : vector<2x512xf32>
    %c2_i32 = arith.constant 2 : i32
    %11 = tpu.dynamic_rotate %10 by %c2_i32 dim 1 : vector<2x512xf32>, i32 -> vector<2x512xf32>
    %12 = arith.maximumf %10, %11 : vector<2x512xf32>
    %c4_i32 = arith.constant 4 : i32
    %13 = tpu.dynamic_rotate %12 by %c4_i32 dim 1 : vector<2x512xf32>, i32 -> vector<2x512xf32>
    %14 = arith.maximumf %12, %13 : vector<2x512xf32>
    %c8_i32 = arith.constant 8 : i32
    %15 = tpu.dynamic_rotate %14 by %c8_i32 dim 1 : vector<2x512xf32>, i32 -> vector<2x512xf32>
    %16 = arith.maximumf %14, %15 : vector<2x512xf32>
    %c16_i32 = arith.constant 16 : i32
    %17 = tpu.dynamic_rotate %16 by %c16_i32 dim 1 : vector<2x512xf32>, i32 -> vector<2x512xf32>
    %18 = arith.maximumf %16, %17 : vector<2x512xf32>
    %19 = tpu.iota {dimensions = array<i32: 1>} : vector<1x128xi32>
    %c1_i32_1 = arith.constant 1 : i32
    %20 = tpu.dynamic_rotate %19 by %c1_i32_1 dim 1 : vector<1x128xi32>, i32 -> vector<1x128xi32>
    %21 = vector.extract_strided_slice %20 {offsets = [0, 0], sizes = [1, 1], strides = [1, 1]} : vector<1x128xi32> to vector<1x1xi32>
    %c1_i32_2 = arith.constant 1 : i32
    %22 = vector.broadcast %c1_i32_2 : i32 to vector<1x1xi32>
    %23 = arith.cmpi sgt, %21, %22 : vector<1x1xi32>
    %24 = arith.extui %23 : vector<1x1xi1> to vector<1x1xi32>
    %25 = arith.sitofp %24 : vector<1x1xi32> to vector<1x1xf32>
    %c0_3 = arith.constant 0 : index
    %c0_4 = arith.constant 0 : index
    %26 = vector.load %arg2[%c0_3, %c0_4] : memref<512x4xf32, #tpu.memory_space<vmem>>, vector<512x4xf32>
    %c0_5 = arith.constant 0 : index
    %c0_6 = arith.constant 0 : index
    %27 = vector.load %arg3[%c0_5, %c0_6] : memref<512x4xf32, #tpu.memory_space<vmem>>, vector<512x4xf32>
    %c0_7 = arith.constant 0 : index
    %c0_8 = arith.constant 0 : index
    %28 = vector.load %arg2[%c0_7, %c0_8] : memref<512x4xf32, #tpu.memory_space<vmem>>, vector<512x4xf32>
    %29 = arith.subf %27, %28 : vector<512x4xf32>
    %30 = vector.broadcast %25 : vector<1x1xf32> to vector<512x4xf32>
    %31 = arith.mulf %30, %29 : vector<512x4xf32>
    %32 = arith.addf %26, %31 : vector<512x4xf32>
    %cst = arith.constant dense<0.000000e+00> : vector<2x4xf32>
    %33 = tpu.matmul %18, %32, %cst {dimension_numbers = #tpu.dot_dimension_numbers<[1], [0], [0], [1], [0, 0, 1, 1], [], []>} : vector<2x512xf32>, vector<512x4xf32>, vector<2x4xf32> -> vector<2x4xf32>
    %c0_9 = arith.constant 0 : index
    %c0_10 = arith.constant 0 : index
    %34 = vector.load %arg4[%c0_9, %c0_10] : memref<1x4xf32, #tpu.memory_space<vmem>>, vector<1x4xf32>
    %35 = vector.broadcast %34 : vector<1x4xf32> to vector<2x4xf32>
    %36 = arith.addf %33, %35 : vector<2x4xf32>
    %cst_11 = arith.constant 0.000000e+00 : f32
    %37 = vector.broadcast %cst_11 : f32 to vector<2x4xf32>
    %38 = arith.maximumf %36, %37 : vector<2x4xf32>
    %c0_12 = arith.constant 0 : index
    %c0_13 = arith.constant 0 : index
    %39 = vector.load %arg5[%c0_12, %c0_13] : memref<4x512xf32, #tpu.memory_space<vmem>>, vector<4x512xf32>
    %cst_14 = arith.constant dense<0.000000e+00> : vector<2x512xf32>
    %40 = tpu.matmul %38, %39, %cst_14 {dimension_numbers = #tpu.dot_dimension_numbers<[1], [0], [0], [1], [0, 0, 1, 1], [], []>} : vector<2x4xf32>, vector<4x512xf32>, vector<2x512xf32> -> vector<2x512xf32>
    %c0_15 = arith.constant 0 : index
    %c0_16 = arith.constant 0 : index
    %41 = vector.load %arg6[%c0_15, %c0_16] : memref<1x512xf32, #tpu.memory_space<vmem>>, vector<1x512xf32>
    %42 = vector.broadcast %41 : vector<1x512xf32> to vector<2x512xf32>
    %43 = arith.addf %40, %42 : vector<2x512xf32>
    %c0_17 = arith.constant 0 : index
    %c0_18 = arith.constant 0 : index
    %44 = vector.load %arg7[%c0_17, %c0_18] : memref<512x4xf32, #tpu.memory_space<vmem>>, vector<512x4xf32>
    %cst_19 = arith.constant dense<0.000000e+00> : vector<2x4xf32>
    %45 = tpu.matmul %8, %44, %cst_19 {dimension_numbers = #tpu.dot_dimension_numbers<[1], [0], [0], [1], [0, 0, 1, 1], [], []>} : vector<2x512xf32>, vector<512x4xf32>, vector<2x4xf32> -> vector<2x4xf32>
    %c0_20 = arith.constant 0 : index
    %c0_21 = arith.constant 0 : index
    %46 = vector.load %arg8[%c0_20, %c0_21] : memref<1x4xf32, #tpu.memory_space<vmem>>, vector<1x4xf32>
    %47 = vector.broadcast %46 : vector<1x4xf32> to vector<2x4xf32>
    %48 = arith.addf %45, %47 : vector<2x4xf32>
    %cst_22 = arith.constant 0.000000e+00 : f32
    %49 = vector.broadcast %cst_22 : f32 to vector<2x4xf32>
    %50 = arith.maximumf %48, %49 : vector<2x4xf32>
    %c0_23 = arith.constant 0 : index
    %c0_24 = arith.constant 0 : index
    %51 = vector.load %arg9[%c0_23, %c0_24] : memref<4x512xf32, #tpu.memory_space<vmem>>, vector<4x512xf32>
    %cst_25 = arith.constant dense<0.000000e+00> : vector<2x512xf32>
    %52 = tpu.matmul %50, %51, %cst_25 {dimension_numbers = #tpu.dot_dimension_numbers<[1], [0], [0], [1], [0, 0, 1, 1], [], []>} : vector<2x4xf32>, vector<4x512xf32>, vector<2x512xf32> -> vector<2x512xf32>
    %c0_26 = arith.constant 0 : index
    %c0_27 = arith.constant 0 : index
    %53 = vector.load %arg10[%c0_26, %c0_27] : memref<1x512xf32, #tpu.memory_space<vmem>>, vector<1x512xf32>
    %54 = vector.broadcast %53 : vector<1x512xf32> to vector<2x512xf32>
    %55 = arith.addf %52, %54 : vector<2x512xf32>
    %56 = arith.mulf %43, %55 : vector<2x512xf32>
    %57 = arith.negf %56 : vector<2x512xf32>
    %58 = math.exp %57 : vector<2x512xf32>
    %cst_28 = arith.constant 1.000000e+00 : f32
    %59 = vector.broadcast %cst_28 : f32 to vector<2x512xf32>
    %60 = arith.addf %59, %58 : vector<2x512xf32>
    %61 = arith.divf %59, %60 : vector<2x512xf32>
    %62 = arith.mulf %0, %61 : vector<2x512xf32>
    %c0_29 = arith.constant 0 : index
    %c0_30 = arith.constant 0 : index
    %63 = vector.load %arg11[%c0_29, %c0_30] : memref<2x512xf32, #tpu.memory_space<vmem>>, vector<2x512xf32>
    tpu.vector_store %arg11[%c0_29, %c0_30], %62 {strides = array<i32>} : memref<2x512xf32, #tpu.memory_space<vmem>>, vector<2x512xf32>,
    %c0_31 = arith.constant 0 : index
    %c0_32 = arith.constant 0 : index
    %64 = vector.load %arg12[%c0_31, %c0_32] : memref<2x512xf32, #tpu.memory_space<vmem>>, vector<2x512xf32>
    tpu.vector_store %arg12[%c0_31, %c0_32], %61 {strides = array<i32>} : memref<2x512xf32, #tpu.memory_space<vmem>>, vector<2x512xf32>,
    return
  }
  func.func @transform_0(%arg0: i32) -> (i32, i32) {
    %c0_i32 = arith.constant 0 : i32
    %c0_i32_0 = arith.constant 0 : i32
    return %arg0, %c0_i32 : i32, i32
  }
  func.func @transform_1(%arg0: i32) -> (i32, i32) {
    %c0_i32 = arith.constant 0 : i32
    %c0_i32_0 = arith.constant 0 : i32
    %c0_i32_1 = arith.constant 0 : i32
    return %c0_i32, %c0_i32_0 : i32, i32
  }
  func.func @transform_2(%arg0: i32) -> (i32, i32) {
    %c0_i32 = arith.constant 0 : i32
    %c0_i32_0 = arith.constant 0 : i32
    %c0_i32_1 = arith.constant 0 : i32
    return %c0_i32, %c0_i32_0 : i32, i32
  }
  func.func @transform_3(%arg0: i32) -> (i32, i32) {
    %c0_i32 = arith.constant 0 : i32
    %c0_i32_0 = arith.constant 0 : i32
    %c0_i32_1 = arith.constant 0 : i32
    return %c0_i32, %c0_i32_0 : i32, i32
  }
  func.func @transform_4(%arg0: i32) -> (i32, i32) {
    %c0_i32 = arith.constant 0 : i32
    %c0_i32_0 = arith.constant 0 : i32
    %c0_i32_1 = arith.constant 0 : i32
    return %c0_i32, %c0_i32_0 : i32, i32
  }
  func.func @transform_5(%arg0: i32) -> (i32, i32) {
    %c0_i32 = arith.constant 0 : i32
    %c0_i32_0 = arith.constant 0 : i32
    %c0_i32_1 = arith.constant 0 : i32
    return %c0_i32, %c0_i32_0 : i32, i32
  }
  func.func @transform_6(%arg0: i32) -> (i32, i32) {
    %c0_i32 = arith.constant 0 : i32
    %c0_i32_0 = arith.constant 0 : i32
    %c0_i32_1 = arith.constant 0 : i32
    return %c0_i32, %c0_i32_0 : i32, i32
  }
  func.func @transform_7(%arg0: i32) -> (i32, i32) {
    %c0_i32 = arith.constant 0 : i32
    %c0_i32_0 = arith.constant 0 : i32
    %c0_i32_1 = arith.constant 0 : i32
    return %c0_i32, %c0_i32_0 : i32, i32
  }
  func.func @transform_8(%arg0: i32) -> (i32, i32) {
    %c0_i32 = arith.constant 0 : i32
    %c0_i32_0 = arith.constant 0 : i32
    %c0_i32_1 = arith.constant 0 : i32
    return %c0_i32, %c0_i32_0 : i32, i32
  }
  func.func @transform_9(%arg0: i32) -> (i32, i32) {
    %c0_i32 = arith.constant 0 : i32
    %c0_i32_0 = arith.constant 0 : i32
    %c0_i32_1 = arith.constant 0 : i32
    return %c0_i32, %c0_i32_0 : i32, i32
  }
  func.func @transform_10(%arg0: i32) -> (i32, i32) {
    %c0_i32 = arith.constant 0 : i32
    %c0_i32_0 = arith.constant 0 : i32
    return %arg0, %c0_i32 : i32, i32
  }
  func.func @transform_11(%arg0: i32) -> (i32, i32) {
    %c0_i32 = arith.constant 0 : i32
    %c0_i32_0 = arith.constant 0 : i32
    return %arg0, %c0_i32 : i32, i32
  }
}

</mosaic_0001>

<bundles_post_ra>
// kernel: paca_layer.1
= control target key start
LH: loop header
LB: loop body
LE: loop exit
PB: predicated region body
PF: predicated region fallthrough
CT: control target
= control target key end

     0   :  { %s1274_s19 = smov 32   ;;  %v56_v5 = vlaneseq  ;;  %vm70_vm1 = vcmask 1041408   ;;  %vm72_vm2 = vcmask 1045508   ;;  %vm74_vm3 = vcmask 1043456   ;;  %s1276_s20 = smov 1   ;;  %s2148_s0 = inlined_call_operand.vmem [shape: f32[2,512], index: 0, kind: input, shape index: {}]   ;;  %s2149_s1 = inlined_call_operand.vmem [shape: f32[512,4], index: 1, kind: input, shape index: {}]   ;;  %s2150_s2 = inlined_call_operand.vmem [shape: f32[512,4], index: 2, kind: input, shape index: {}]   ;;  %s2151_s3 = inlined_call_operand.vmem [shape: f32[1,4], index: 3, kind: input, shape index: {}]   ;;  %s2152_s4 = inlined_call_operand.vmem [shape: f32[4,512], index: 4, kind: input, shape index: {}]   ;;  %s2153_s6 = inlined_call_operand.vmem [shape: f32[512,4], index: 6, kind: input, shape index: {}]   ;;  %s2154_s7 = inlined_call_operand.vmem [shape: f32[1,4], index: 7, kind: input, shape index: {}]   ;;  %s2155_s8 = inlined_call_operand.vmem [shape: f32[4,512], index: 8, kind: input, shape index: {}]   ;;  %s2156_s5 = inlined_call_operand.vmem [shape: f32[1,512], index: 5, kind: input, shape index: {}]   ;;  %s2157_s9 = inlined_call_operand.vmem [shape: f32[1,512], index: 9, kind: input, shape index: {}]   ;;  %s2158_s11 = inlined_call_operand.vmem [shape: f32[2,512], index: 11, kind: output, shape index: {1}]   ;;  %s2159_s10 = inlined_call_operand.vmem [shape: f32[2,512], index: 10, kind: output, shape index: {0}]  }
   0x1   :  { %v1345_v0 = vld [vmem:[%s2148_s0] sm:$0xff]  ;;  %s1275_s0 = smov 64   ;;  %s1277_s21 = smov 2   ;;  %vm760_vm11 = vcmask 31744  }
   0x2   :  { %39 = vst [vmem:[#allocation1] ss:$4 sm:$0xff] %v1345_v0  ;;  %v1348_v8 = vand.u32 127, %v56_v5  ;;  %s1278_s22 = smov 4   ;;  %s1280_s23 = smov 8  }
   0x3   :  { %s1281_s29 = smov 16  }
   0x4   :  { %vm58_vm0 = vcmp.lt.s32.totalorder %v1348_v8, 32  ;;  %vm96_vm4 = vcmp.lt.s32.totalorder %v1348_v8, 64  ;;  %vm158_vm5 = vcmp.lt.s32.totalorder %v1348_v8, 1  ;;  %vm193_vm6 = vcmp.lt.s32.totalorder %v1348_v8, 2 }
   0x5   :  { %vm228_vm8 = vcmp.lt.s32.totalorder %v1348_v8, 4  ;;  %vm263_vm9 = vcmp.lt.s32.totalorder %v1348_v8, 8  ;;  %vm298_vm10 = vcmp.lt.s32.totalorder %v1348_v8, 16 }
   0x9   :  { %v42_v1 = vld.sshfl [vmem:[#allocation1 + $0x10] sm:$0xff pattern:$0x73625140]  ;;  %v40_v2 = vld.sshfl [vmem:[#allocation1] sm:$0xff pattern:$0x73625140] }
   0xa   :  { %52 = vrot.lane.b32.xlu1 %v42_v1, %s1274_s19  ;;  %48 = vrot.lane.b32.xlu0 %v40_v2, %s1274_s19  ;;  %v43_v3 = vld.sshfl [vmem:[#allocation1 + $0x18] sm:$0xff pattern:$0x73625140]  ;;  %v41_v4 = vld.sshfl [vmem:[#allocation1 + $0x8] sm:$0xff pattern:$0x73625140] }
  0x12   :  { %54 = vrot.lane.b32.xlu1 %v43_v3, %s1274_s19  ;;  %50 = vrot.lane.b32.xlu0 %v41_v4, %s1274_s19 }
  0x7c   :  { %v53_v6 = vpop.permute.xlu1 %52  ;;  %v49_v7 = vpop.permute.xlu0 %48 }
  0x84   :  { %v55_v9 = vpop.permute.xlu1 %54  ;;  %v51_v10 = vpop.permute.xlu0 %50 }
  0x85   :  { %v59_v11 = vsel %vm58_vm0, %v53_v6, %v55_v9  ;;  %v60_v12 = vsel %vm58_vm0, %v51_v10, %v53_v6  ;;  %v61_v13 = vsel %vm58_vm0, %v49_v7, %v51_v10  ;;  %v62_v17 = vsel %vm58_vm0, %v55_v9, %v49_v7 }
  0x86   :  { %v69_v14 = vrot.slane %v59_v11, 2  ;;  %v67_v15 = vrot.slane %v61_v13, 6  ;;  %v68_v16 = vrot.slane %v60_v12, 4 }
  0x88   :  { %v71_v18 = vsel %vm70_vm1, %v62_v17, %v67_v15  ;;  %v73_v19 = vsel %vm72_vm2, %v68_v16, %v69_v14 }
  0x89   :  { %v75_v20 = vsel %vm74_vm3, %v71_v18, %v73_v19 }
  0x8a   :  { %v77_v21 = vmax.f32 %v1345_v0, %v75_v20 }
  0x8c   :  { %79 = vst [vmem:[#allocation1] ss:$4 sm:$0xff] %v77_v21 }
  0x93   :  { %v83_v22 = vld.sshfl [vmem:[#allocation1 + $0x18] sm:$0xff pattern:$0x73625140]  ;;  %v82_v23 = vld.sshfl [vmem:[#allocation1 + $0x10] sm:$0xff pattern:$0x73625140] }
  0x94   :  { %94 = vrot.lane.b32.xlu1 %v83_v22, %s1275_s0  ;;  %92 = vrot.lane.b32.xlu0 %v82_v23, %s1275_s0  ;;  %v80_v24 = vld.sshfl [vmem:[#allocation1] sm:$0xff pattern:$0x73625140]  ;;  %v81_v25 = vld.sshfl [vmem:[#allocation1 + $0x8] sm:$0xff pattern:$0x73625140] }
  0x95   :  { %88 = vrot.lane.b32.xlu2 %v80_v24, %s1275_s0 }
  0x9d   :  { %90 = vrot.lane.b32.xlu2 %v81_v25, %s1275_s0 }
  0xef   :  { %v89_v26 = vpop.permute.xlu2 %88 }
  0xf7   :  { %v91_v27 = vpop.permute.xlu2 %90 }
  0xf8   :  { %v99_v28 = vsel %vm96_vm4, %v89_v26, %v91_v27 }
  0xf9   :  { %v105_v34 = vrot.slane %v99_v28, 6 }
 0x106   :  { %v95_v29 = vpop.permute.xlu1 %94  ;;  %v93_v30 = vpop.permute.xlu0 %92 }
 0x107   :  { %v100_v31 = vsel %vm96_vm4, %v95_v29, %v89_v26  ;;  %v97_v32 = vsel %vm96_vm4, %v93_v30, %v95_v29  ;;  %v98_v33 = vsel %vm96_vm4, %v91_v27, %v93_v30 }
 0x108   :  { %v106_v35 = vrot.slane %v98_v33, 4  ;;  %v107_v36 = vrot.slane %v97_v32, 2  ;;  %v108_v37 = vsel %vm70_vm1, %v100_v31, %v105_v34 }
 0x10a   :  { %v109_v38 = vsel %vm72_vm2, %v106_v35, %v107_v36 }
 0x10b   :  { %v110_v39 = vsel %vm74_vm3, %v108_v37, %v109_v38 }
 0x10c   :  { %v112_v40 = vmax.f32 %v77_v21, %v110_v39  ;;  %v1279_v39 = vmov 0.0  }
 0x10e   :  { %114 = vst [vmem:[#allocation1] ss:$4 sm:$0xff] %v112_v40 }
 0x115   :  { %v115_v41 = vld.sshfl [vmem:[#allocation1] sm:$0xff pattern:$0x73625140]  ;;  %v116_v42 = vld.sshfl [vmem:[#allocation1 + $0x8] sm:$0xff pattern:$0x73625140] }
 0x116   :  { %v117_v43 = vld.sshfl [vmem:[#allocation1 + $0x10] sm:$0xff pattern:$0x73625140]  ;;  %v119_v44 = vrot.slane %v115_v41, 6  ;;  %v120_v45 = vrot.slane %v116_v42, 4 }
 0x117   :  { %v121_v46 = vrot.slane %v117_v43, 2  ;;  %v118_v47 = vld.sshfl [vmem:[#allocation1 + $0x18] sm:$0xff pattern:$0x73625140] }
 0x118   :  { %v122_v48 = vsel %vm70_vm1, %v118_v47, %v119_v44 }
 0x119   :  { %v123_v49 = vsel %vm72_vm2, %v120_v45, %v121_v46 }
 0x11a   :  { %v124_v50 = vsel %vm74_vm3, %v122_v48, %v123_v49 }
 0x11b   :  { %v1362_v51 = vmax.f32 %v112_v40, %v124_v50 }
 0x11d   :  { %128 = vst [vmem:[#allocation1] ss:$4 sm:$0xff] %v1362_v51 }
 0x124   :  { %v1365_v52 = vld.sshfl [vmem:[#allocation1] sm:$0xff pattern:$0x73625140]  ;;  %v1367_v53 = vld.sshfl [vmem:[#allocation1 + $0x8] sm:$0xff pattern:$0x73625140] }
 0x125   :  { %v1369_v54 = vld.sshfl [vmem:[#allocation1 + $0x10] sm:$0xff pattern:$0x73625140]  ;;  %v1371_v55 = vld.sshfl [vmem:[#allocation1 + $0x18] sm:$0xff pattern:$0x73625140] }
 0x126   :  { %141 = vst [vmem:[#allocation1] ss:$4 sm:$0xff] %v1345_v0 }
 0x12d   :  { %v144_v56 = vld.sshfl [vmem:[#allocation1 + $0x10] sm:$0xff pattern:$0x73625140]  ;;  %v143_v57 = vld.sshfl [vmem:[#allocation1 + $0x8] sm:$0xff pattern:$0x73625140] }
 0x12e   :  { %154 = vrot.lane.b32.xlu1 %v144_v56, %s1276_s20  ;;  %152 = vrot.lane.b32.xlu0 %v143_v57, %s1276_s20  ;;  %v142_v58 = vld.sshfl [vmem:[#allocation1] sm:$0xff pattern:$0x73625140]  ;;  %v145_v59 = vld.sshfl [vmem:[#allocation1 + $0x18] sm:$0xff pattern:$0x73625140] }
 0x12f   :  { %150 = vrot.lane.b32.xlu2 %v142_v58, %s1276_s20 }
 0x137   :  { %156 = vrot.lane.b32.xlu2 %v145_v59, %s1276_s20 }
 0x189   :  { %v151_v60 = vpop.permute.xlu2 %150 }
 0x191   :  { %v157_v61 = vpop.permute.xlu2 %156 }
 0x192   :  { %v162_v7 = vsel %vm158_vm5, %v157_v61, %v151_v60 }
 0x1a0   :  { %v155_v62 = vpop.permute.xlu1 %154  ;;  %v153_v63 = vpop.permute.xlu0 %152 }
 0x1a1   :  { %v159_v1 = vsel %vm158_vm5, %v155_v62, %v157_v61  ;;  %v160_v2 = vsel %vm158_vm5, %v153_v63, %v155_v62  ;;  %v161_v3 = vsel %vm158_vm5, %v151_v60, %v153_v63 }
 0x1a2   :  { %v169_v4 = vrot.slane %v159_v1, 2  ;;  %v167_v5 = vrot.slane %v161_v3, 6  ;;  %v168_v6 = vrot.slane %v160_v2, 4  ;;  %v335_v1 = vld [vmem:[%s2149_s1 + $0x78] sm:$0xff] }
 0x1a3   :  { %v399_v2 = vld [vmem:[%s2150_s2 + $0x78] sm:$0xff] }
 0x1a4   :  { %v170_v9 = vsel %vm70_vm1, %v162_v7, %v167_v5  ;;  %v171_v10 = vsel %vm72_vm2, %v168_v6, %v169_v4  ;;  %v351_v3 = vld [vmem:[%s2149_s1 + $0xf8] sm:$0xff]  ;;  %v463_v4 = vsub.f32 %v399_v2, %v335_v1 }
 0x1a5   :  { %v172_v11 = vsel %vm74_vm3, %v170_v9, %v171_v10  ;;  %v415_v5 = vld [vmem:[%s2150_s2 + $0xf8] sm:$0xff] }
 0x1a6   :  { %v174_v12 = vmax.f32 %v1345_v0, %v172_v11  ;;  %v367_v6 = vld [vmem:[%s2149_s1 + $0x178] sm:$0xff]  ;;  %v479_v9 = vsub.f32 %v415_v5, %v351_v3 }
 0x1a7   :  { %v431_v7 = vld [vmem:[%s2150_s2 + $0x178] sm:$0xff] }
 0x1a8   :  { %176 = vst [vmem:[#allocation1] ss:$4 sm:$0xff] %v174_v12  ;;  %v495_v10 = vsub.f32 %v431_v7, %v367_v6  ;;  %v383_v11 = vld [vmem:[%s2149_s1 + $0x1f8] sm:$0xff]  ;;  %v428_v7 = vld [vmem:[%s2150_s2 + $0x160] sm:$0xff] }
 0x1af   :  { %v179_v13 = vld.sshfl [vmem:[#allocation1 + $0x10] sm:$0xff pattern:$0x73625140]  ;;  %v178_v14 = vld.sshfl [vmem:[#allocation1 + $0x8] sm:$0xff pattern:$0x73625140] }
 0x1b0   :  { %189 = vrot.lane.b32.xlu2 %v179_v13, %s1277_s21  ;;  %187 = vrot.lane.b32.xlu1 %v178_v14, %s1277_s21  ;;  %v177_v15 = vld.sshfl [vmem:[#allocation1] sm:$0xff pattern:$0x73625140]  ;;  %v180_v16 = vld.sshfl [vmem:[#allocation1 + $0x18] sm:$0xff pattern:$0x73625140] }
 0x1b1   :  { %185 = vrot.lane.b32.xlu0 %v177_v15, %s1277_s21  ;;  %v334_v13 = vld [vmem:[%s2149_s1 + $0x70] sm:$0xff] }
 0x1b9   :  { %191 = vrot.lane.b32.xlu0 %v180_v16, %s1277_s21  ;;  %v398_v16 = vld [vmem:[%s2150_s2 + $0x70] sm:$0xff] }
 0x20a   :  { %v190_v19 = vpop.permute.xlu2 %189 }
 0x222   :  { %v188_v18 = vpop.permute.xlu1 %187 }
 0x223   :  { %v186_v17 = vpop.permute.xlu0 %185  ;;  %v195_v20 = vsel %vm193_vm6, %v188_v18, %v190_v19 }
 0x224   :  { %v196_v21 = vsel %vm193_vm6, %v186_v17, %v188_v18  ;;  %v203_v25 = vrot.slane %v195_v20, 4  ;;  %v414_v18 = vld [vmem:[%s2150_s2 + $0xf0] sm:$0xff] }
 0x225   :  { %v202_v26 = vrot.slane %v196_v21, 6  ;;  %v462_v21 = vsub.f32 %v398_v16, %v334_v13 }
 0x22b   :  { %v192_v22 = vpop.permute.xlu0 %191 }
 0x22c   :  { %v194_v23 = vsel %vm193_vm6, %v190_v19, %v192_v22  ;;  %v197_v24 = vsel %vm193_vm6, %v192_v22, %v186_v17  ;;  %v350_v17 = vld [vmem:[%s2149_s1 + $0xf0] sm:$0xff] }
 0x22d   :  { %v204_v27 = vrot.slane %v194_v23, 2  ;;  %v205_v28 = vsel %vm70_vm1, %v197_v24, %v202_v26  ;;  %v478_v22 = vsub.f32 %v414_v18, %v350_v17  ;;  %v366_v23 = vld [vmem:[%s2149_s1 + $0x170] sm:$0xff] }
 0x22e   :  { %v430_v24 = vld [vmem:[%s2150_s2 + $0x170] sm:$0xff] }
 0x22f   :  { %v206_v29 = vsel %vm72_vm2, %v203_v25, %v204_v27  ;;  %v382_v25 = vld [vmem:[%s2149_s1 + $0x1f0] sm:$0xff] }
 0x230   :  { %v207_v30 = vsel %vm74_vm3, %v205_v28, %v206_v29  ;;  %v494_v28 = vsub.f32 %v430_v24, %v366_v23  ;;  %v446_v29 = vld [vmem:[%s2150_s2 + $0x1f0] sm:$0xff] }
 0x231   :  { %v209_v31 = vmax.f32 %v174_v12, %v207_v30  ;;  %v447_v12 = vld [vmem:[%s2150_s2 + $0x1f8] sm:$0xff]  ;;  %v333_v30 = vld [vmem:[%s2149_s1 + $0x68] sm:$0xff] }
 0x232   :  { %v511_v15 = vsub.f32 %v447_v12, %v383_v11 }
 0x233   :  { %211 = vst [vmem:[#allocation1] ss:$4 sm:$0xff] %v209_v31 }
 0x23a   :  { %v214_v32 = vld.sshfl [vmem:[#allocation1 + $0x10] sm:$0xff pattern:$0x73625140]  ;;  %v213_v33 = vld.sshfl [vmem:[#allocation1 + $0x8] sm:$0xff pattern:$0x73625140] }
 0x23b   :  { %224 = vrot.lane.b32.xlu0 %v214_v32, %s1278_s22  ;;  %222 = vrot.lane.b32.xlu2 %v213_v33, %s1278_s22  ;;  %v212_v34 = vld.sshfl [vmem:[#allocation1] sm:$0xff pattern:$0x73625140]  ;;  %v215_v35 = vld.sshfl [vmem:[#allocation1 + $0x18] sm:$0xff pattern:$0x73625140] }
 0x23c   :  { %220 = vrot.lane.b32.xlu1 %v212_v34, %s1278_s22 }
 0x243   :  { %315 = vrot.lane.b32.xlu2 %v1348_v8, %s1276_s20  ;;  %v133_v8 = vrot.slane %v1371_v55, 6 }
 0x244   :  { %226 = vrot.lane.b32.xlu1 %v215_v35, %s1278_s22 }
 0x295   :  { %v223_v36 = vpop.permute.xlu2 %222 }
 0x29d   :  { %v316_v38 = vpop.permute.xlu2 %315 }
 0x29e   :  { %vm317_vm7 = vcmp.gt.s32.totalorder %v316_v38, 1  ;;  %v365_v38 = vld [vmem:[%s2149_s1 + $0x168] sm:$0xff] }
 0x29f   :  { %v1225_v40 = vsel %vm317_vm7, 1.0, %v1279_v39 }
 0x2a0   :  { %1246 = vpush %v1225_v40 }
 0x2ad   :  { %v225_v41 = vpop.permute.xlu0 %224 }
 0x2ae   :  { %v221_v37 = vpop.permute.xlu1 %220  ;;  %v230_v42 = vsel %vm228_vm8, %v223_v36, %v225_v41 }
 0x2af   :  { %v231_v43 = vsel %vm228_vm8, %v221_v37, %v223_v36  ;;  %v238_v47 = vrot.slane %v230_v42, 4  ;;  %v349_v36 = vld [vmem:[%s2149_s1 + $0xe8] sm:$0xff] }
 0x2b0   :  { %v237_v48 = vrot.slane %v231_v43, 6  ;;  %v429_v43 = vld [vmem:[%s2150_s2 + $0x168] sm:$0xff] }
 0x2b6   :  { %v227_v44 = vpop.permute.xlu1 %226 }
 0x2b7   :  { %v229_v45 = vsel %vm228_vm8, %v225_v41, %v227_v44  ;;  %v232_v46 = vsel %vm228_vm8, %v227_v44, %v221_v37  ;;  %v413_v37 = vld [vmem:[%s2150_s2 + $0xe8] sm:$0xff]  ;;  %v510_v41 = vsub.f32 %v446_v29, %v382_v25 }
 0x2b8   :  { %v239_v49 = vrot.slane %v229_v45, 2  ;;  %v240_v50 = vsel %vm70_vm1, %v232_v46, %v237_v48  ;;  %v381_v44 = vld [vmem:[%s2149_s1 + $0x1e8] sm:$0xff]  ;;  %v477_v48 = vsub.f32 %v413_v37, %v349_v36 }
 0x2b9   :  { %v445_v45 = vld [vmem:[%s2150_s2 + $0x1e8] sm:$0xff] }
 0x2ba   :  { %v241_v56 = vsel %vm72_vm2, %v238_v47, %v239_v49  ;;  %v332_v49 = vld [vmem:[%s2149_s1 + $0x60] sm:$0xff]  ;;  %v509_v5 = vsub.f32 %v445_v45, %v381_v44 }
 0x2bb   :  { %v242_v57 = vsel %vm74_vm3, %v240_v50, %v241_v56 }
 0x2bc   :  { %v1393_v58 = vmax.f32 %v209_v31, %v242_v57  ;;  %v397_v31 = vld [vmem:[%s2150_s2 + $0x68] sm:$0xff] }
 0x2bd   :  { %v461_v42 = vsub.f32 %v397_v31, %v333_v30 }
 0x2be   :  { %246 = vst [vmem:[#allocation1] ss:$4 sm:$0xff] %v1393_v58 }
 0x2c5   :  { %v249_v59 = vld.sshfl [vmem:[#allocation1 + $0x10] sm:$0xff pattern:$0x73625140]  ;;  %v248_v60 = vld.sshfl [vmem:[#allocation1 + $0x8] sm:$0xff pattern:$0x73625140] }
 0x2c6   :  { %259 = vrot.lane.b32.xlu2 %v249_v59, %s1280_s23  ;;  %257 = vrot.lane.b32.xlu1 %v248_v60, %s1280_s23  ;;  %v247_v61 = vld.sshfl [vmem:[#allocation1] sm:$0xff pattern:$0x73625140]  ;;  %v250_v62 = vld.sshfl [vmem:[#allocation1 + $0x18] sm:$0xff pattern:$0x73625140]  ;;  %v493_v60 = vsub.f32 %v429_v43, %v365_v38 }
 0x2c7   :  { %255 = vrot.lane.b32.xlu0 %v247_v61, %s1280_s23  ;;  %v396_v61 = vld [vmem:[%s2150_s2 + $0x60] sm:$0xff] }
 0x2cf   :  { %261 = vrot.lane.b32.xlu0 %v250_v62, %s1280_s23  ;;  %v348_v62 = vld [vmem:[%s2149_s1 + $0xe0] sm:$0xff] }
 0x2d1   :  { %s1247_s24 = spop %1246 }
 0x2d2   :  { %v1396_v63 = vstv %s1247_s24 }
 0x2d3   :  { %v531_v14 = vmul.f32 %v1396_v63, %v463_v4  ;;  %v547_v19 = vmul.f32 %v1396_v63, %v479_v9  ;;  %v563_v20 = vmul.f32 %v1396_v63, %v495_v10  ;;  %v579_v27 = vmul.f32 %v1396_v63, %v511_v15  ;;  %v380_v9 = vld [vmem:[%s2149_s1 + $0x1e0] sm:$0xff]  ;;  %v395_v15 = vld [vmem:[%s2150_s2 + $0x58] sm:$0xff] }
 0x2d4   :  { %v530_v34 = vmul.f32 %v1396_v63, %v462_v21  ;;  %v546_v35 = vmul.f32 %v1396_v63, %v478_v22  ;;  %v562_v40 = vmul.f32 %v1396_v63, %v494_v28  ;;  %v578_v57 = vmul.f32 %v1396_v63, %v510_v41  ;;  %v411_v21 = vld [vmem:[%s2150_s2 + $0xd8] sm:$0xff]  ;;  %v330_v41 = vld [vmem:[%s2149_s1 + $0x50] sm:$0xff] }
 0x2d5   :  { %v595_v26 = vadd.f32 %v531_v14, %v335_v1  ;;  %v611_v32 = vadd.f32 %v547_v19, %v351_v3  ;;  %v627_v33 = vadd.f32 %v563_v20, %v367_v6  ;;  %v643_v39 = vadd.f32 %v579_v27, %v383_v11  ;;  %v412_v1 = vld [vmem:[%s2150_s2 + $0xe0] sm:$0xff]  ;;  %v331_v14 = vld [vmem:[%s2149_s1 + $0x58] sm:$0xff] }
 0x2d6   :  { %v594_v46 = vadd.f32 %v530_v34, %v334_v13  ;;  %v610_v47 = vadd.f32 %v546_v35, %v350_v17  ;;  %v626_v56 = vadd.f32 %v562_v40, %v366_v23  ;;  %v529_v59 = vmul.f32 %v1396_v63, %v461_v42  ;;  %v364_v6 = vld [vmem:[%s2149_s1 + $0x160] sm:$0xff]  ;;  %v347_v20 = vld [vmem:[%s2149_s1 + $0xd8] sm:$0xff] }
 0x2d7   :  { %658 = vmatpush.msra.mxu0 %v595_v26  ;;  %678 = vmatpush.msra.mxu1 %v611_v32  ;;  %v545_v4 = vmul.f32 %v1396_v63, %v477_v48  ;;  %v642_v11 = vadd.f32 %v578_v57, %v382_v25  ;;  %v444_v13 = vld [vmem:[%s2150_s2 + $0x1e0] sm:$0xff]  ;;  %v561_v18 = vmul.f32 %v1396_v63, %v493_v60  ;;  %v363_v25 = vld [vmem:[%s2149_s1 + $0x158] sm:$0xff]  ;;  %v410_v48 = vld [vmem:[%s2150_s2 + $0xd0] sm:$0xff] }
 0x2d8   :  { %698 = vmatpush.msra.mxu2 %v627_v33  ;;  %718 = vmatpush.msra.mxu3 %v643_v39  ;;  %v593_v12 = vadd.f32 %v529_v59, %v333_v30  ;;  %v577_v19 = vmul.f32 %v1396_v63, %v509_v5  ;;  %v460_v22 = vsub.f32 %v396_v61, %v332_v49  ;;  %v427_v26 = vld [vmem:[%s2150_s2 + $0x158] sm:$0xff]  ;;  %v362_v60 = vld [vmem:[%s2149_s1 + $0x150] sm:$0xff] }
 0x2d9   :  { %659 = vmatpush.msra.mxu0 %v594_v46  ;;  %679 = vmatpush.msra.mxu1 %v610_v47  ;;  %v609_v17 = vadd.f32 %v545_v4, %v349_v36  ;;  %v476_v23 = vsub.f32 %v412_v1, %v348_v62  ;;  %v492_v24 = vsub.f32 %v428_v7, %v364_v6  ;;  %v379_v35 = vld [vmem:[%s2149_s1 + $0x1d8] sm:$0xff]  ;;  %v394_v46 = vld [vmem:[%s2150_s2 + $0x50] sm:$0xff] }
 0x2da   :  { %699 = vmatpush.msra.mxu2 %v626_v56  ;;  %719 = vmatpush.msra.mxu3 %v642_v11  ;;  %v625_v27 = vadd.f32 %v561_v18, %v365_v38  ;;  %v641_v28 = vadd.f32 %v577_v19, %v381_v44  ;;  %v508_v29 = vsub.f32 %v444_v13, %v380_v9  ;;  %v443_v36 = vld [vmem:[%s2150_s2 + $0x1d8] sm:$0xff]  ;;  %v346_v47 = vld [vmem:[%s2149_s1 + $0xd0] sm:$0xff] }
 0x2db   :  { %660 = vmatpush.msra.mxu0 %v593_v12  ;;  %680 = vmatpush.msra.mxu1 %v609_v17  ;;  %v459_v30 = vsub.f32 %v395_v15, %v331_v14  ;;  %v528_v31 = vmul.f32 %v1396_v63, %v460_v22  ;;  %v544_v32 = vmul.f32 %v1396_v63, %v476_v23  ;;  %v426_v61 = vld [vmem:[%s2150_s2 + $0x150] sm:$0xff]  ;;  %v409_v17 = vld [vmem:[%s2150_s2 + $0xc8] sm:$0xff] }
 0x2dc   :  { %v560_v33 = vmul.f32 %v1396_v63, %v492_v24  ;;  %v475_v34 = vsub.f32 %v411_v21, %v347_v20  ;;  %700 = vmatpush.msra.mxu2 %v625_v27  ;;  %720 = vmatpush.msra.mxu3 %v641_v28  ;;  %v576_v38 = vmul.f32 %v1396_v63, %v508_v29  ;;  %v442_v7 = vld [vmem:[%s2150_s2 + $0x1d0] sm:$0xff]  ;;  %v361_v22 = vld [vmem:[%s2149_s1 + $0x148] sm:$0xff] }
 0x2dd   :  { %v527_v39 = vmul.f32 %v1396_v63, %v459_v30  ;;  %v491_v40 = vsub.f32 %v427_v26, %v363_v25  ;;  %v592_v42 = vadd.f32 %v528_v31, %v332_v49  ;;  %v608_v43 = vadd.f32 %v544_v32, %v348_v62  ;;  %v378_v62 = vld [vmem:[%s2149_s1 + $0x1d0] sm:$0xff]  ;;  %v425_v23 = vld [vmem:[%s2150_s2 + $0x148] sm:$0xff]  ;;  %v328_v30 = vld [vmem:[%s2149_s1 + $0x40] sm:$0xff] }
 0x2de   :  { %v624_v44 = vadd.f32 %v560_v33, %v364_v6  ;;  %v543_v45 = vmul.f32 %v1396_v63, %v475_v34  ;;  %v640_v56 = vadd.f32 %v576_v38, %v380_v9  ;;  %v507_v59 = vsub.f32 %v443_v36, %v379_v35  ;;  %v329_v9 = vld [vmem:[%s2149_s1 + $0x48] sm:$0xff]  ;;  %v344_v36 = vld [vmem:[%s2149_s1 + $0xc0] sm:$0xff] }
 0x2df   :  { %v591_v57 = vadd.f32 %v527_v39, %v331_v14  ;;  %v559_v49 = vmul.f32 %v1396_v63, %v491_v40  ;;  %661 = vmatpush.msra.mxu0 %v592_v42  ;;  %681 = vmatpush.msra.mxu1 %v608_v43  ;;  %v458_v13 = vsub.f32 %v394_v46, %v330_v41  ;;  %v377_v28 = vld [vmem:[%s2149_s1 + $0x1c8] sm:$0xff]  ;;  %v360_v42 = vld [vmem:[%s2149_s1 + $0x140] sm:$0xff] }
 0x2e0   :  { %v607_v6 = vadd.f32 %v543_v45, %v347_v20  ;;  %701 = vmatpush.msra.mxu2 %v624_v44  ;;  %721 = vmatpush.msra.mxu3 %v640_v56  ;;  %v575_v12 = vmul.f32 %v1396_v63, %v507_v59  ;;  %v474_v14 = vsub.f32 %v410_v48, %v346_v47  ;;  %v441_v29 = vld [vmem:[%s2150_s2 + $0x1c8] sm:$0xff]  ;;  %v424_v43 = vld [vmem:[%s2150_s2 + $0x140] sm:$0xff]  ;;  %v391_v59 = vld [vmem:[%s2150_s2 + $0x38] sm:$0xff] }
 0x2e1   :  { %662 = vmatpush.msra.mxu0 %v591_v57  ;;  %v490_v15 = vsub.f32 %v426_v61, %v362_v60  ;;  %v506_v20 = vsub.f32 %v442_v7, %v378_v62  ;;  %v489_v40 = vsub.f32 %v425_v23, %v361_v22  ;;  %v505_v48 = vsub.f32 %v441_v29, %v377_v28  ;;  %v407_v61 = vld [vmem:[%s2150_s2 + $0xb8] sm:$0xff] }
 0x2e2   :  { %682 = vmatpush.msra.mxu1 %v607_v6  ;;  %v639_v19 = vadd.f32 %v575_v12, %v379_v35  ;;  %v542_v26 = vmul.f32 %v1396_v63, %v474_v14  ;;  %v392_v35 = vld [vmem:[%s2150_s2 + $0x40] sm:$0xff]  ;;  %v423_v6 = vld [vmem:[%s2150_s2 + $0x138] sm:$0xff]  ;;  %v326_v12 = vld [vmem:[%s2149_s1 + $0x30] sm:$0xff] }
 0x2e3   :  { %v558_v27 = vmul.f32 %v1396_v63, %v490_v15  ;;  %v574_v32 = vmul.f32 %v1396_v63, %v506_v20  ;;  %v557_v56 = vmul.f32 %v1396_v63, %v489_v40  ;;  %v456_v57 = vsub.f32 %v392_v35, %v328_v30 }
 0x2e4   :  { %722 = vmatpush.msra.mxu3 %v639_v19  ;;  %v606_v38 = vadd.f32 %v542_v26, %v346_v47  ;;  %v440_v47 = vld [vmem:[%s2150_s2 + $0x1c0] sm:$0xff]  ;;  %v406_v19 = vld [vmem:[%s2150_s2 + $0xb0] sm:$0xff] }
 0x2e5   :  { %v622_v39 = vadd.f32 %v558_v27, %v362_v60  ;;  %v638_v44 = vadd.f32 %v574_v32, %v378_v62  ;;  %v343_v60 = vld [vmem:[%s2149_s1 + $0xb8] sm:$0xff]  ;;  %v621_v7 = vadd.f32 %v557_v56, %v361_v22  ;;  %v374_v26 = vld [vmem:[%s2149_s1 + $0x1b0] sm:$0xff]  ;;  %v373_v56 = vld [vmem:[%s2149_s1 + $0x1a8] sm:$0xff] }
 0x2e6   :  { %683 = vmatpush.msra.mxu1 %v606_v38  ;;  %v438_v32 = vld [vmem:[%s2150_s2 + $0x1b0] sm:$0xff] }
 0x2e7   :  { %723 = vmatpush.msra.mxu3 %v638_v44  ;;  %v341_v44 = vld [vmem:[%s2149_s1 + $0xa8] sm:$0xff] }
 0x320   :  { %v1492_v2 = vpop.permute.xlu2 %259 }
 0x338   :  { %v258_v50 = vpop.permute.xlu1 %257 }
 0x339   :  { %v1494_v3 = vpop.permute.xlu0 %255  ;;  %v1509_v10 = vsel %vm263_vm9, %v258_v50, %v1492_v2 }
 0x33a   :  { %v266_v16 = vsel %vm263_vm9, %v1494_v3, %v258_v50  ;;  %v273_v1 = vrot.slane %v1509_v10, 4  ;;  %v393_v10 = vld [vmem:[%s2150_s2 + $0x48] sm:$0xff] }
 0x33b   :  { %v272_v37 = vrot.slane %v266_v16, 6  ;;  %v345_v16 = vld [vmem:[%s2149_s1 + $0xc8] sm:$0xff]  ;;  %v457_v21 = vsub.f32 %v393_v10, %v329_v9 }
 0x33c   :  { %v473_v34 = vsub.f32 %v409_v17, %v345_v16  ;;  %v390_v17 = vld [vmem:[%s2150_s2 + $0x30] sm:$0xff] }
 0x33d   :  { %v525_v33 = vmul.f32 %v1396_v63, %v457_v21  ;;  %v454_v38 = vsub.f32 %v390_v17, %v326_v12 }
 0x33e   :  { %v541_v46 = vmul.f32 %v1396_v63, %v473_v34  ;;  %v389_v34 = vld [vmem:[%s2150_s2 + $0x28] sm:$0xff] }
 0x33f   :  { %v589_v45 = vadd.f32 %v525_v33, %v329_v9  ;;  %v524_v9 = vmul.f32 %v1396_v63, %v456_v57  ;;  %v325_v33 = vld [vmem:[%s2149_s1 + $0x28] sm:$0xff] }
 0x340   :  { %v605_v62 = vadd.f32 %v541_v46, %v345_v16  ;;  %v471_v16 = vsub.f32 %v407_v61, %v343_v60  ;;  %v324_v61 = vld [vmem:[%s2149_s1 + $0x20] sm:$0xff] }
 0x341   :  { %v262_v50 = vpop.permute.xlu0 %261  ;;  %v588_v20 = vadd.f32 %v524_v9, %v328_v30 }
 0x342   :  { %v264_v4 = vsel %vm263_vm9, %v1492_v2, %v262_v50  ;;  %v267_v5 = vsel %vm263_vm9, %v262_v50, %v1494_v3  ;;  %v623_v3 = vadd.f32 %v559_v49, %v363_v25  ;;  %v526_v25 = vmul.f32 %v1396_v63, %v458_v13  ;;  %v327_v50 = vld [vmem:[%s2149_s1 + $0x38] sm:$0xff]  ;;  %684 = vmatpush.msra.mxu1 %v605_v62  ;;  %v388_v62 = vld [vmem:[%s2150_s2 + $0x20] sm:$0xff] }
 0x343   :  { %v274_v2 = vrot.slane %v264_v4, 2  ;;  %v275_v11 = vsel %vm70_vm1, %v267_v5, %v272_v37  ;;  %v408_v37 = vld [vmem:[%s2150_s2 + $0xc0] sm:$0xff]  ;;  %v488_v4 = vsub.f32 %v424_v43, %v360_v42  ;;  %v359_v5 = vld [vmem:[%s2149_s1 + $0x138] sm:$0xff]  ;;  %v455_v15 = vsub.f32 %v391_v59, %v327_v50 }
 0x344   :  { %702 = vmatpush.msra.mxu2 %v623_v3  ;;  %v472_v49 = vsub.f32 %v408_v37, %v344_v36  ;;  %v439_v3 = vld [vmem:[%s2150_s2 + $0x1b8] sm:$0xff]  ;;  %v487_v23 = vsub.f32 %v423_v6, %v359_v5  ;;  %v539_v29 = vmul.f32 %v1396_v63, %v471_v16  ;;  %v502_v59 = vsub.f32 %v438_v32, %v374_v26  ;;  %v420_v16 = vld [vmem:[%s2150_s2 + $0x120] sm:$0xff] }
 0x345   :  { %v276_v18 = vsel %vm72_vm2, %v273_v1, %v274_v2  ;;  %v573_v1 = vmul.f32 %v1396_v63, %v505_v48  ;;  %v556_v14 = vmul.f32 %v1396_v63, %v488_v4  ;;  %v522_v48 = vmul.f32 %v1396_v63, %v454_v38 }
 0x346   :  { %v277_v24 = vsel %vm74_vm3, %v275_v11, %v276_v18  ;;  %703 = vmatpush.msra.mxu2 %v622_v39  ;;  %v540_v10 = vmul.f32 %v1396_v63, %v472_v49  ;;  %v375_v11 = vld [vmem:[%s2149_s1 + $0x1b8] sm:$0xff]  ;;  %v1681_v18 = vld [vmem:[%s2149_s1 + $0xb0] sm:$0xff] }
 0x347   :  { %v1616_v31 = vmax.f32 %v1393_v58, %v277_v24  ;;  %v590_v58 = vadd.f32 %v526_v25, %v330_v41  ;;  %v376_v41 = vld [vmem:[%s2149_s1 + $0x1c0] sm:$0xff]  ;;  %v637_v13 = vadd.f32 %v573_v1, %v377_v28  ;;  %v358_v24 = vld [vmem:[%s2149_s1 + $0x130] sm:$0xff]  ;;  %v620_v27 = vadd.f32 %v556_v14, %v360_v42 }
 0x348   :  { %v504_v2 = vsub.f32 %v440_v47, %v376_v41  ;;  %704 = vmatpush.msra.mxu2 %v621_v7  ;;  %v604_v21 = vadd.f32 %v540_v10, %v344_v36  ;;  %v422_v25 = vld [vmem:[%s2150_s2 + $0x130] sm:$0xff]  ;;  %v523_v28 = vmul.f32 %v1396_v63, %v455_v15  ;;  %v503_v30 = vsub.f32 %v439_v3, %v375_v11  ;;  %v357_v47 = vld [vmem:[%s2149_s1 + $0x128] sm:$0xff]  ;;  %v356_v15 = vld [vmem:[%s2149_s1 + $0x120] sm:$0xff] }
 0x349   :  { %281 = vst [vmem:[#allocation1] ss:$4 sm:$0xff] %v1616_v31  ;;  %663 = vmatpush.msra.mxu0 %v590_v58  ;;  %724 = vmatpush.msra.mxu3 %v637_v13  ;;  %v555_v58 = vmul.f32 %v1396_v63, %v487_v23  ;;  %v603_v42 = vadd.f32 %v539_v29, %v343_v60  ;;  %v437_v60 = vld [vmem:[%s2150_s2 + $0x1a8] sm:$0xff]  ;;  %v323_v23 = vld [vmem:[%s2149_s1 + $0x18] sm:$0xff] }
 0x34a   :  { %v572_v22 = vmul.f32 %v1396_v63, %v504_v2  ;;  %685 = vmatpush.msra.mxu1 %v604_v21  ;;  %v587_v40 = vadd.f32 %v523_v28, %v327_v50  ;;  %v571_v43 = vmul.f32 %v1396_v63, %v503_v30  ;;  %705 = vmatpush.msra.mxu2 %v620_v27  ;;  %v421_v50 = vld [vmem:[%s2150_s2 + $0x128] sm:$0xff]  ;;  %v340_v2 = vld [vmem:[%s2149_s1 + $0xa0] sm:$0xff]  ;;  %v387_v29 = vld [vmem:[%s2150_s2 + $0x18] sm:$0xff] }
 0x34b   :  { %664 = vmatpush.msra.mxu0 %v589_v45  ;;  %v405_v45 = vld [vmem:[%s2150_s2 + $0xa8] sm:$0xff]  ;;  %v619_v46 = vadd.f32 %v555_v58, %v359_v5  ;;  %v486_v49 = vsub.f32 %v422_v25, %v358_v24  ;;  %v586_v1 = vadd.f32 %v522_v48, %v326_v12  ;;  %v453_v5 = vsub.f32 %v389_v34, %v325_v33  ;;  %v339_v30 = vld [vmem:[%s2149_s1 + $0x98] sm:$0xff]  ;;  %v386_v48 = vld [vmem:[%s2150_s2 + $0x10] sm:$0xff] }
 0x34c   :  { %v636_v37 = vadd.f32 %v572_v22, %v376_v41  ;;  %v470_v41 = vsub.f32 %v406_v19, %v1681_v18  ;;  %v635_v57 = vadd.f32 %v571_v43, %v375_v11  ;;  %686 = vmatpush.msra.mxu1 %v603_v42  ;;  %v570_v7 = vmul.f32 %v1396_v63, %v502_v59  ;;  %v404_v11 = vld [vmem:[%s2150_s2 + $0xa0] sm:$0xff]  ;;  %v435_v42 = vld [vmem:[%s2150_s2 + $0x198] sm:$0xff]  ;;  %v322_v43 = vld [vmem:[%s2149_s1 + $0x10] sm:$0xff] }
 0x34d   :  { %665 = vmatpush.msra.mxu0 %v588_v20  ;;  %706 = vmatpush.msra.mxu2 %v619_v46  ;;  %v554_v6 = vmul.f32 %v1396_v63, %v486_v49  ;;  %v469_v9 = vsub.f32 %v405_v45, %v341_v44  ;;  %v485_v10 = vsub.f32 %v421_v50, %v357_v47  ;;  %v436_v22 = vld [vmem:[%s2150_s2 + $0x1a0] sm:$0xff]  ;;  %v354_v49 = vld [vmem:[%s2149_s1 + $0x110] sm:$0xff] }
 0x34e   :  { %725 = vmatpush.msra.mxu3 %v636_v37  ;;  %v538_v4 = vmul.f32 %v1396_v63, %v470_v41  ;;  %v521_v12 = vmul.f32 %v1396_v63, %v453_v5  ;;  %v501_v13 = vsub.f32 %v437_v60, %v373_v56  ;;  %v452_v14 = vsub.f32 %v388_v62, %v324_v61  ;;  %v419_v37 = vld [vmem:[%s2150_s2 + $0x118] sm:$0xff]  ;;  %v338_v41 = vld [vmem:[%s2149_s1 + $0x90] sm:$0xff] }
 0x34f   :  { %666 = vmatpush.msra.mxu0 %v587_v40  ;;  %v618_v17 = vadd.f32 %v554_v6, %v358_v24  ;;  %v634_v19 = vadd.f32 %v570_v7, %v374_v26  ;;  %v537_v20 = vmul.f32 %v1396_v63, %v469_v9  ;;  %v553_v21 = vmul.f32 %v1396_v63, %v485_v10  ;;  %v371_v40 = vld [vmem:[%s2149_s1 + $0x198] sm:$0xff]  ;;  %v418_v59 = vld [vmem:[%s2150_s2 + $0x110] sm:$0xff] }
 0x350   :  { %v284_v35 = vld.sshfl [vmem:[#allocation1 + $0x10] sm:$0xff pattern:$0x73625140]  ;;  %v283_v36 = vld.sshfl [vmem:[#allocation1 + $0x8] sm:$0xff pattern:$0x73625140]  ;;  %726 = vmatpush.msra.mxu3 %v635_v57  ;;  %v602_v3 = vadd.f32 %v538_v4, %v1681_v18  ;;  %v585_v24 = vadd.f32 %v521_v12, %v325_v33  ;;  %v569_v26 = vmul.f32 %v1396_v63, %v501_v13  ;;  %v520_v27 = vmul.f32 %v1396_v63, %v452_v14 }
 0x351   :  { %294 = vrot.lane.b32.xlu0 %v284_v35, %s1281_s29  ;;  %292 = vrot.lane.b32.xlu2 %v283_v36, %s1281_s29  ;;  %v282_v39 = vld.sshfl [vmem:[#allocation1] sm:$0xff pattern:$0x73625140]  ;;  %v285_v25 = vld.sshfl [vmem:[#allocation1 + $0x18] sm:$0xff pattern:$0x73625140]  ;;  %v468_v28 = vsub.f32 %v404_v11, %v340_v2  ;;  %v601_v32 = vadd.f32 %v537_v20, %v341_v44  ;;  %v617_v34 = vadd.f32 %v553_v21, %v357_v47 }
 0x352   :  { %290 = vrot.lane.b32.xlu1 %v282_v39, %s1281_s29  ;;  %667 = vmatpush.msra.mxu0 %v586_v1  ;;  %v372_v18 = vld [vmem:[%s2149_s1 + $0x1a0] sm:$0xff]  ;;  %v484_v35 = vsub.f32 %v420_v16, %v356_v15  ;;  %v403_v33 = vld [vmem:[%s2150_s2 + $0x98] sm:$0xff]  ;;  %v633_v58 = vadd.f32 %v569_v26, %v373_v56  ;;  %v584_v38 = vadd.f32 %v520_v27, %v324_v61  ;;  %v402_v47 = vld [vmem:[%s2150_s2 + $0x90] sm:$0xff] }
 0x353   :  { %687 = vmatpush.msra.mxu1 %v602_v3  ;;  %707 = vmatpush.msra.mxu2 %v618_v17  ;;  %v355_v36 = vld [vmem:[%s2149_s1 + $0x118] sm:$0xff]  ;;  %v536_v39 = vmul.f32 %v1396_v63, %v468_v28  ;;  %v500_v45 = vsub.f32 %v436_v22, %v372_v18  ;;  %v451_v46 = vsub.f32 %v387_v29, %v323_v23  ;;  %v370_v9 = vld [vmem:[%s2149_s1 + $0x190] sm:$0xff]  ;;  %v385_v14 = vld [vmem:[%s2150_s2 + $0x8] sm:$0xff] }
 0x354   :  { %727 = vmatpush.msra.mxu3 %v634_v19  ;;  %668 = vmatpush.msra.mxu0 %v585_v24  ;;  %v552_v44 = vmul.f32 %v1396_v63, %v484_v35  ;;  %v467_v56 = vsub.f32 %v403_v33, %v339_v30  ;;  %v483_v57 = vsub.f32 %v419_v37, %v355_v36  ;;  %v434_v10 = vld [vmem:[%s2150_s2 + $0x190] sm:$0xff]  ;;  %v401_v16 = vld [vmem:[%s2150_s2 + $0x88] sm:$0xff]  ;;  %v320_v28 = vld [vmem:[%s2149_s1] sm:$0xff] }
 0x355   :  { %688 = vmatpush.msra.mxu1 %v601_v32  ;;  %708 = vmatpush.msra.mxu2 %v617_v34  ;;  %v600_v50 = vadd.f32 %v536_v39, %v340_v2  ;;  %v568_v61 = vmul.f32 %v1396_v63, %v500_v45  ;;  %v519_v62 = vmul.f32 %v1396_v63, %v451_v46  ;;  %v321_v2 = vld [vmem:[%s2149_s1 + $0x8] sm:$0xff]  ;;  %v384_v29 = vld [vmem:[%s2150_s2] sm:$0xff] }
 0x356   :  { %728 = vmatpush.msra.mxu3 %v633_v58  ;;  %669 = vmatpush.msra.mxu0 %v584_v38  ;;  %v616_v60 = vadd.f32 %v552_v44, %v356_v15  ;;  %v499_v1 = vsub.f32 %v435_v42, %v371_v40  ;;  %v535_v4 = vmul.f32 %v1396_v63, %v467_v56  ;;  %v337_v15 = vld [vmem:[%s2149_s1 + $0x88] sm:$0xff]  ;;  %v336_v35 = vld [vmem:[%s2149_s1 + $0x80] sm:$0xff] }
 0x357   :  { %689 = vmatpush.msra.mxu1 %v600_v50  ;;  %v551_v5 = vmul.f32 %v1396_v63, %v483_v57  ;;  %v450_v6 = vsub.f32 %v386_v48, %v322_v43  ;;  %v466_v7 = vsub.f32 %v402_v47, %v338_v41  ;;  %v632_v11 = vadd.f32 %v568_v61, %v372_v18  ;;  %v353_v18 = vld [vmem:[%s2149_s1 + $0x108] sm:$0xff]  ;;  %v400_v33 = vld [vmem:[%s2150_s2 + $0x80] sm:$0xff] }
 0x358   :  { %709 = vmatpush.msra.mxu2 %v616_v60  ;;  %v583_v3 = vadd.f32 %v519_v62, %v323_v23  ;;  %v567_v12 = vmul.f32 %v1396_v63, %v499_v1  ;;  %v482_v13 = vsub.f32 %v418_v59, %v354_v49  ;;  %v599_v17 = vadd.f32 %v535_v4, %v339_v30  ;;  %v417_v22 = vld [vmem:[%s2150_s2 + $0x108] sm:$0xff]  ;;  %v352_v39 = vld [vmem:[%s2149_s1 + $0x100] sm:$0xff] }
 0x359   :  { %v615_v19 = vadd.f32 %v551_v5, %v355_v36  ;;  %v518_v20 = vmul.f32 %v1396_v63, %v450_v6  ;;  %v534_v21 = vmul.f32 %v1396_v63, %v466_v7  ;;  %v369_v23 = vld [vmem:[%s2149_s1 + $0x188] sm:$0xff]  ;;  %729 = vmatpush.msra.mxu3 %v632_v11  ;;  %v498_v26 = vsub.f32 %v434_v10, %v370_v9  ;;  %v368_v45 = vld [vmem:[%s2149_s1 + $0x180] sm:$0xff] }
 0x35a   :  { %296 = vrot.lane.b32.xlu1 %v285_v25, %s1281_s29  ;;  %670 = vmatpush.msra.mxu0 %v583_v3  ;;  %v631_v25 = vadd.f32 %v567_v12, %v371_v40  ;;  %v550_v24 = vmul.f32 %v1396_v63, %v482_v13  ;;  %v433_v27 = vld [vmem:[%s2150_s2 + $0x188] sm:$0xff]  ;;  %v449_v34 = vsub.f32 %v385_v14, %v321_v2  ;;  %v416_v40 = vld [vmem:[%s2150_s2 + $0x100] sm:$0xff] }
 0x35b   :  { %690 = vmatpush.msra.mxu1 %v599_v17  ;;  %710 = vmatpush.msra.mxu2 %v615_v19  ;;  %v582_v30 = vadd.f32 %v518_v20, %v322_v43  ;;  %v598_v32 = vadd.f32 %v534_v21, %v338_v41  ;;  %v566_v37 = vmul.f32 %v1396_v63, %v498_v26  ;;  %v432_v46 = vld [vmem:[%s2150_s2 + $0x180] sm:$0xff] }
 0x35c   :  { %730 = vmatpush.msra.mxu3 %v631_v25  ;;  %v614_v36 = vadd.f32 %v550_v24, %v354_v49  ;;  %v465_v58 = vsub.f32 %v401_v16, %v337_v15  ;;  %v481_v38 = vsub.f32 %v417_v22, %v353_v18  ;;  %v517_v42 = vmul.f32 %v1396_v63, %v449_v34  ;;  %v739_v26 = vld [vmem:[%s2152_s4] sm:$0xff]  ;;  %v883_v34 = vld [vmem:[%s2153_s6 + $0xf8] sm:$0xff] }
 0x35d   :  { %671 = vmatpush.msra.mxu0 %v582_v30  ;;  %691 = vmatpush.msra.mxu1 %v598_v32  ;;  %v497_v43 = vsub.f32 %v433_v27, %v369_v23  ;;  %v448_v44 = vsub.f32 %v384_v29, %v320_v28  ;;  %v630_v48 = vadd.f32 %v566_v37, %v370_v9  ;;  %v134_v25 = vrot.slane %v1365_v52, 4  ;;  %v740_v27 = vld [vmem:[%s2152_s4 + $0x8] sm:$0xff]  ;;  %v867_v32 = vld [vmem:[%s2153_s6 + $0x78] sm:$0xff] }
 0x35e   :  { %711 = vmatpush.msra.mxu2 %v614_v36  ;;  %v533_v41 = vmul.f32 %v1396_v63, %v465_v58  ;;  %v549_v47 = vmul.f32 %v1396_v63, %v481_v38  ;;  %v464_v50 = vsub.f32 %v400_v33, %v336_v35  ;;  %v581_v56 = vadd.f32 %v517_v42, %v321_v2  ;;  %v914_v42 = vld [vmem:[%s2153_s6 + $0x1f0] sm:$0xff] }
 0x35f   :  { %v565_v57 = vmul.f32 %v1396_v63, %v497_v43  ;;  %v516_v49 = vmul.f32 %v1396_v63, %v448_v44  ;;  %v480_v59 = vsub.f32 %v416_v40, %v352_v39  ;;  %731 = vmatpush.msra.mxu3 %v630_v48  ;;  %v496_v1 = vsub.f32 %v432_v46, %v368_v45  ;;  %v898_v40 = vld [vmem:[%s2153_s6 + $0x170] sm:$0xff]  ;;  %v865_v43 = vld [vmem:[%s2153_s6 + $0x68] sm:$0xff]  ;;  %v864_v48 = vld [vmem:[%s2153_s6 + $0x60] sm:$0xff] }
 0x360   :  { %v597_v60 = vadd.f32 %v533_v41, %v337_v15  ;;  %v613_v61 = vadd.f32 %v549_v47, %v353_v18  ;;  %v532_v62 = vmul.f32 %v1396_v63, %v464_v50  ;;  %672 = vmatpush.msra.mxu0 %v581_v56  ;;  %v135_v24 = vrot.slane %v1367_v53, 2  ;;  %v881_v44 = vld [vmem:[%s2153_s6 + $0xe8] sm:$0xff]  ;;  %v880_v41 = vld [vmem:[%s2153_s6 + $0xe0] sm:$0xff]  ;;  %v863_v56 = vld [vmem:[%s2153_s6 + $0x58] sm:$0xff] }
 0x361   :  { %v629_v4 = vadd.f32 %v565_v57, %v369_v23  ;;  %v580_v5 = vadd.f32 %v516_v49, %v320_v28  ;;  %v548_v6 = vmul.f32 %v1396_v63, %v480_v59  ;;  %v564_v9 = vmul.f32 %v1396_v63, %v496_v1  ;;  %v913_v46 = vld [vmem:[%s2153_s6 + $0x1e8] sm:$0xff]  ;;  %v896_v47 = vld [vmem:[%s2153_s6 + $0x160] sm:$0xff]  ;;  %v879_v57 = vld [vmem:[%s2153_s6 + $0xd8] sm:$0xff] }
 0x362   :  { %692 = vmatpush.msra.mxu1 %v597_v60  ;;  %712 = vmatpush.msra.mxu2 %v613_v61  ;;  %v596_v7 = vadd.f32 %v532_v62, %v336_v35  ;;  %v136_v52 = vsel %vm70_vm1, %v1369_v54, %v133_v8  ;;  %v137_v53 = vsel %vm72_vm2, %v134_v25, %v135_v24  ;;  %v899_v35 = vld [vmem:[%s2153_s6 + $0x178] sm:$0xff]  ;;  %v912_v50 = vld [vmem:[%s2153_s6 + $0x1e0] sm:$0xff]  ;;  %v862_v60 = vld [vmem:[%s2153_s6 + $0x50] sm:$0xff] }
 0x363   :  { %732 = vmatpush.msra.mxu3 %v629_v4  ;;  %673 = vmatpush.msra.mxu0 %v580_v5  ;;  %v612_v10 = vadd.f32 %v548_v6, %v352_v39  ;;  %v628_v2 = vadd.f32 %v564_v9, %v368_v45  ;;  %v138_v55 = vsel %vm74_vm3, %v136_v52, %v137_v53  ;;  %v915_v54 = vld [vmem:[%s2153_s6 + $0x1f8] sm:$0xff]  ;;  %v866_v39 = vld [vmem:[%s2153_s6 + $0x70] sm:$0xff]  ;;  %v897_v45 = vld [vmem:[%s2153_s6 + $0x168] sm:$0xff] }
 0x364   :  { %693 = vmatpush.msra.mxu1 %v596_v7  ;;  %v140_v33 = vmax.f32 %v1362_v51, %v138_v55  ;;  %v882_v51 = vld [vmem:[%s2153_s6 + $0xf0] sm:$0xff]  ;;  %v895_v49 = vld [vmem:[%s2153_s6 + $0x158] sm:$0xff]  ;;  %v861_v4 = vld [vmem:[%s2153_s6 + $0x48] sm:$0xff] }
 0x365   :  { %713 = vmatpush.msra.mxu2 %v612_v10  ;;  %733 = vmatpush.msra.mxu3 %v628_v2  ;;  %v911_v59 = vld [vmem:[%s2153_s6 + $0x1d8] sm:$0xff]  ;;  %v878_v61 = vld [vmem:[%s2153_s6 + $0xd0] sm:$0xff]  ;;  %v877_v5 = vld [vmem:[%s2153_s6 + $0xc8] sm:$0xff] }
 0x366   :  { %v894_v62 = vld [vmem:[%s2153_s6 + $0x150] sm:$0xff]  ;;  %v893_v6 = vld [vmem:[%s2153_s6 + $0x148] sm:$0xff]  ;;  %v860_v9 = vld [vmem:[%s2153_s6 + $0x40] sm:$0xff] }
 0x367   :  { %v910_v1 = vld [vmem:[%s2153_s6 + $0x1d0] sm:$0xff]  ;;  %v909_v7 = vld [vmem:[%s2153_s6 + $0x1c8] sm:$0xff]  ;;  %v876_v10 = vld [vmem:[%s2153_s6 + $0xc0] sm:$0xff] }
 0x368   :  { %v892_v2 = vld [vmem:[%s2153_s6 + $0x140] sm:$0xff]  ;;  %v855_v24 = vld [vmem:[%s2153_s6 + $0x18] sm:$0xff]  ;;  %v902_v52 = vld [vmem:[%s2153_s6 + $0x190] sm:$0xff] }
 0x369   :  { %v888_v8 = vld [vmem:[%s2153_s6 + $0x120] sm:$0xff]  ;;  %v853_v53 = vld [vmem:[%s2153_s6 + $0x8] sm:$0xff] }
 0x36a   :  { %v904_v25 = vld [vmem:[%s2153_s6 + $0x1a0] sm:$0xff]  ;;  %v869_v55 = vld [vmem:[%s2153_s6 + $0x88] sm:$0xff] }
 0x3ab   :  { %v293_v12 = vpop.permute.xlu2 %292 }
 0x3c3   :  { %v295_v3 = vpop.permute.xlu0 %294 }
 0x3c4   :  { %v291_v11 = vpop.permute.xlu1 %290  ;;  %v300_v13 = vsel %vm298_vm10, %v293_v12, %v295_v3 }
 0x3c5   :  { %v301_v14 = vsel %vm298_vm10, %v291_v11, %v293_v12  ;;  %v308_v19 = vrot.slane %v300_v13, 4  ;;  %v875_v12 = vld [vmem:[%s2153_s6 + $0xb8] sm:$0xff] }
 0x3c6   :  { %v307_v20 = vrot.slane %v301_v14, 6  ;;  %v891_v13 = vld [vmem:[%s2153_s6 + $0x138] sm:$0xff] }
 0x3c7   :  { %v907_v14 = vld [vmem:[%s2153_s6 + $0x1b8] sm:$0xff] }
 0x3cc   :  { %v297_v15 = vpop.permute.xlu1 %296 }
 0x3cd   :  { %v299_v16 = vsel %vm298_vm10, %v295_v3, %v297_v15  ;;  %v302_v17 = vsel %vm298_vm10, %v297_v15, %v291_v11  ;;  %v908_v11 = vld [vmem:[%s2153_s6 + $0x1c0] sm:$0xff]  ;;  %v859_v3 = vld [vmem:[%s2153_s6 + $0x38] sm:$0xff]  ;;  %v858_v15 = vld [vmem:[%s2153_s6 + $0x30] sm:$0xff] }
 0x3ce   :  { %v309_v63 = vrot.slane %v299_v16, 2  ;;  %v310_v21 = vsel %vm70_vm1, %v302_v17, %v307_v20  ;;  %v874_v16 = vld [vmem:[%s2153_s6 + $0xb0] sm:$0xff]  ;;  %v857_v20 = vld [vmem:[%s2153_s6 + $0x28] sm:$0xff] }
 0x3cf   :  { %v890_v17 = vld [vmem:[%s2153_s6 + $0x130] sm:$0xff] }
 0x3d0   :  { %v311_v18 = vsel %vm72_vm2, %v308_v19, %v309_v63  ;;  %v906_v19 = vld [vmem:[%s2153_s6 + $0x1b0] sm:$0xff]  ;;  %v873_v63 = vld [vmem:[%s2153_s6 + $0xa8] sm:$0xff] }
 0x3d1   :  { %v312_v22 = vsel %vm74_vm3, %v310_v21, %v311_v18  ;;  %v889_v21 = vld [vmem:[%s2153_s6 + $0x128] sm:$0xff] }
 0x3d2   :  { %v314_v23 = vmax.f32 %v1616_v31, %v312_v22  ;;  %v905_v18 = vld [vmem:[%s2153_s6 + $0x1a8] sm:$0xff]  ;;  %v856_v22 = vld [vmem:[%s2153_s6 + $0x20] sm:$0xff] }
 0x3d4   :  { %649 = vst [vmem:[#allocation1] ss:$4 sm:$0xff] %v314_v23  ;;  %v872_v23 = vld [vmem:[%s2153_s6 + $0xa0] sm:$0xff] }
 0x3db   :  { %v650_v28 = vld.sshfl [vmem:[#allocation1] sm:$0xff pattern:$0x73625140]  ;;  %v651_v29 = vld.sshfl [vmem:[#allocation1 + $0x8] sm:$0xff pattern:$0x73625140] }
 0x3dc   :  { %674 = vmatmul.f32.vlgmr.msra.gmra.mxu0 %v650_v28  ;;  %694 = vmatmul.f32.vlgmr.msra.gmra.mxu1 %v651_v29  ;;  %v652_v31 = vld.sshfl [vmem:[#allocation1 + $0x10] sm:$0xff pattern:$0x73625140]  ;;  %v653_v30 = vld.sshfl [vmem:[#allocation1 + $0x18] sm:$0xff pattern:$0x73625140] }
 0x3dd   :  { %714 = vmatmul.f32.vlgmr.msra.gmra.mxu2 %v652_v31  ;;  %734 = vmatmul.f32.vlgmr.msra.gmra.mxu3 %v653_v30  ;;  %753 = vst [vmem:[#allocation1] ss:$2 sm:$0xff] %v739_v26  ;;  %v871_v26 = vld [vmem:[%s2153_s6 + $0x98] sm:$0xff]  ;;  %v854_v29 = vld [vmem:[%s2153_s6 + $0x10] sm:$0xff] }
 0x3de   :  { %755 = vst [vmem:[#allocation1 + $0x10] ss:$2 sm:$0xff] %v740_v27  ;;  %v887_v27 = vld [vmem:[%s2153_s6 + $0x118] sm:$0xff]  ;;  %v870_v31 = vld [vmem:[%s2153_s6 + $0x90] sm:$0xff] }
 0x3df   :  { %v903_v28 = vld [vmem:[%s2153_s6 + $0x198] sm:$0xff]  ;;  %v886_v30 = vld [vmem:[%s2153_s6 + $0x110] sm:$0xff] }
 0x3e4   :  { %v756_v36 = vld.sshfl [vmem:[#allocation1] sm:$0xff pattern:$0x75316420]  ;;  %v757_v37 = vld.sshfl [vmem:[#allocation1 + $0x8] sm:$0xff pattern:$0x75316420] }
 0x3e5   :  { %1226 = vmatpush.msk.msrb.mxu0 %vm74_vm3, %v756_v36  ;;  %1228 = vmatpush.msk.msrb.mxu1 %vm74_vm3, %v757_v37  ;;  %v758_v58 = vld.sshfl [vmem:[#allocation1 + $0x10] sm:$0xff pattern:$0x75316420]  ;;  %v759_v38 = vld.sshfl [vmem:[#allocation1 + $0x18] sm:$0xff pattern:$0x75316420] }
 0x3e6   :  { %1230 = vmatpush.msk.msrb.mxu2 %vm74_vm3, %v758_v58  ;;  %1232 = vmatpush.msk.msrb.mxu3 %vm74_vm3, %v759_v38  ;;  %921 = vst [vmem:[#allocation1] ss:$4 sm:$0xff] %v140_v33  ;;  %v884_v33 = vld [vmem:[%s2153_s6 + $0x100] sm:$0xff] }
 0x3e7   :  { %930 = vmatpush.msra.mxu0 %v867_v32  ;;  %950 = vmatpush.msra.mxu1 %v883_v34  ;;  %v885_v32 = vld [vmem:[%s2153_s6 + $0x108] sm:$0xff]  ;;  %v900_v36 = vld [vmem:[%s2153_s6 + $0x180] sm:$0xff] }
 0x3e8   :  { %970 = vmatpush.msra.mxu2 %v899_v35  ;;  %990 = vmatpush.msra.mxu3 %v915_v54  ;;  %v901_v34 = vld [vmem:[%s2153_s6 + $0x188] sm:$0xff]  ;;  %v852_v35 = vld [vmem:[%s2153_s6] sm:$0xff] }
 0x3e9   :  { %931 = vmatpush.msra.mxu0 %v866_v39  ;;  %951 = vmatpush.msra.mxu1 %v882_v51  ;;  %v868_v54 = vld [vmem:[%s2153_s6 + $0x80] sm:$0xff] }
 0x3ea   :  { %971 = vmatpush.msra.mxu2 %v898_v40  ;;  %991 = vmatpush.msra.mxu3 %v914_v42  ;;  %v1256_v37 = vld [vmem:[%s2151_s3] ss:$0 sm:$0xff] }
 0x3eb   :  { %932 = vmatpush.msra.mxu0 %v865_v43  ;;  %952 = vmatpush.msra.mxu1 %v881_v44 }
 0x3ec   :  { %972 = vmatpush.msra.mxu2 %v897_v45  ;;  %992 = vmatpush.msra.mxu3 %v913_v46 }
 0x3ed   :  { %933 = vmatpush.msra.mxu0 %v864_v48  ;;  %953 = vmatpush.msra.mxu1 %v880_v41  ;;  %v922_v46 = vld.sshfl [vmem:[#allocation1] sm:$0xff pattern:$0x73625140]  ;;  %v923_v48 = vld.sshfl [vmem:[#allocation1 + $0x8] sm:$0xff pattern:$0x73625140] }
 0x3ee   :  { %973 = vmatpush.msra.mxu2 %v896_v47  ;;  %993 = vmatpush.msra.mxu3 %v912_v50  ;;  %v924_v41 = vld.sshfl [vmem:[#allocation1 + $0x10] sm:$0xff pattern:$0x73625140]  ;;  %v925_v47 = vld.sshfl [vmem:[#allocation1 + $0x18] sm:$0xff pattern:$0x73625140] }
 0x3ef   :  { %934 = vmatpush.msra.mxu0 %v863_v56  ;;  %954 = vmatpush.msra.mxu1 %v879_v57  ;;  %v1012_v50 = vld [vmem:[%s2155_s8 + $0x8] sm:$0xff]  ;;  %v1011_v56 = vld [vmem:[%s2155_s8] sm:$0xff] }
 0x3f0   :  { %974 = vmatpush.msra.mxu2 %v895_v49  ;;  %994 = vmatpush.msra.mxu3 %v911_v59  ;;  %1027 = vst [vmem:[#allocation1 + $0x10] ss:$2 sm:$0xff] %v1012_v50 }
 0x3f1   :  { %935 = vmatpush.msra.mxu0 %v862_v60  ;;  %955 = vmatpush.msra.mxu1 %v878_v61  ;;  %1025 = vst [vmem:[#allocation1] ss:$2 sm:$0xff] %v1011_v56 }
 0x3f2   :  { %975 = vmatpush.msra.mxu2 %v894_v62  ;;  %995 = vmatpush.msra.mxu3 %v910_v1  ;;  %v1257_v1 = vld [vmem:[%s2154_s7] ss:$0 sm:$0xff] }
 0x3f3   :  { %936 = vmatpush.msra.mxu0 %v861_v4  ;;  %956 = vmatpush.msra.mxu1 %v877_v5 }
 0x3f4   :  { %976 = vmatpush.msra.mxu2 %v893_v6  ;;  %996 = vmatpush.msra.mxu3 %v909_v7 }
 0x3f5   :  { %937 = vmatpush.msra.mxu0 %v860_v9  ;;  %957 = vmatpush.msra.mxu1 %v876_v10 }
 0x3f6   :  { %977 = vmatpush.msra.mxu2 %v892_v2  ;;  %997 = vmatpush.msra.mxu3 %v908_v11 }
 0x3f7   :  { %938 = vmatpush.msra.mxu0 %v859_v3  ;;  %958 = vmatpush.msra.mxu1 %v875_v12  ;;  %v1030_v57 = vld.sshfl [vmem:[#allocation1 + $0x10] sm:$0xff pattern:$0x75316420]  ;;  %v1031_v49 = vld.sshfl [vmem:[#allocation1 + $0x18] sm:$0xff pattern:$0x75316420] }
 0x3f8   :  { %978 = vmatpush.msra.mxu2 %v891_v13  ;;  %998 = vmatpush.msra.mxu3 %v907_v14  ;;  %v1029_v59 = vld.sshfl [vmem:[#allocation1 + $0x8] sm:$0xff pattern:$0x75316420]  ;;  %v1028_v60 = vld.sshfl [vmem:[#allocation1] sm:$0xff pattern:$0x75316420] }
 0x3f9   :  { %939 = vmatpush.msra.mxu0 %v858_v15  ;;  %959 = vmatpush.msra.mxu1 %v874_v16  ;;  %v741_v14 = vld [vmem:[%s2156_s5] sm:$0xf] }
 0x3fa   :  { %979 = vmatpush.msra.mxu2 %v890_v17  ;;  %999 = vmatpush.msra.mxu3 %v906_v19  ;;  %v1013_v15 = vld [vmem:[%s2157_s9] sm:$0xf]  ;;  %v743_v16 = vperm.slane %v741_v14, 0  ;;  %v744_v17 = vperm.slane %v741_v14, 1 }
 0x3fb   :  { %940 = vmatpush.msra.mxu0 %v857_v20  ;;  %960 = vmatpush.msra.mxu1 %v873_v63  ;;  %v1015_v19 = vperm.slane %v1013_v15, 0  ;;  %v1016_v20 = vperm.slane %v1013_v15, 1 }
 0x3fc   :  { %980 = vmatpush.msra.mxu2 %v889_v21  ;;  %1000 = vmatpush.msra.mxu3 %v905_v18 }
 0x3fd   :  { %941 = vmatpush.msra.mxu0 %v856_v22  ;;  %961 = vmatpush.msra.mxu1 %v872_v23 }
 0x3fe   :  { %981 = vmatpush.msra.mxu2 %v888_v8  ;;  %1001 = vmatpush.msra.mxu3 %v904_v25  ;;  %v745_v25 = vperm.slane %v741_v14, 2 }
 0x3ff   :  { %942 = vmatpush.msra.mxu0 %v855_v24  ;;  %962 = vmatpush.msra.mxu1 %v871_v26 }
 0x400   :  { %982 = vmatpush.msra.mxu2 %v887_v27  ;;  %1002 = vmatpush.msra.mxu3 %v903_v28  ;;  %v746_v27 = vperm.slane %v741_v14, 3  ;;  %v1017_v28 = vperm.slane %v1013_v15, 2 }
 0x401   :  { %943 = vmatpush.msra.mxu0 %v854_v29  ;;  %963 = vmatpush.msra.mxu1 %v870_v31  ;;  %v1018_v29 = vperm.slane %v1013_v15, 3 }
 0x402   :  { %983 = vmatpush.msra.mxu2 %v886_v30  ;;  %1003 = vmatpush.msra.mxu3 %v902_v52 }
 0x403   :  { %944 = vmatpush.msra.mxu0 %v853_v53  ;;  %964 = vmatpush.msra.mxu1 %v869_v55 }
 0x404   :  { %984 = vmatpush.msra.mxu2 %v885_v32  ;;  %1004 = vmatpush.msra.mxu3 %v901_v34 }
 0x405   :  { %945 = vmatpush.msra.mxu0 %v852_v35  ;;  %965 = vmatpush.msra.mxu1 %v868_v54 }
 0x406   :  { %985 = vmatpush.msra.mxu2 %v884_v33  ;;  %1005 = vmatpush.msra.mxu3 %v900_v36 }
 0x459   :  { %v675_v58 = vpop.f32.mrf.mxu0  ;;  %v695_v39 = vpop.f32.mrf.mxu1 }
 0x45a   :  { %v676_v38 = vadd.f32 %v1256_v37, %v675_v58 }
 0x45c   :  { %v696_v51 = vadd.f32 %v695_v39, %v676_v38 }
 0x460   :  { %v715_v40 = vpop.f32.mrf.mxu2  ;;  %v735_v43 = vpop.f32.mrf.mxu3 }
 0x461   :  { %v716_v42 = vadd.f32 %v715_v40, %v696_v51 }
 0x463   :  { %v736_v44 = vadd.f32 %v735_v43, %v716_v42 }
 0x465   :  { %v738_v45 = vmax.f32 %v736_v44, 0.0 }
 0x467   :  { %1227 = vmatmul.msk.f32.vlgmr.msrb.gmra.mxu0 %vm760_vm11, %v738_v45  ;;  %1229 = vmatmul.msk.f32.vlgmr.msrb.gmra.mxu1 %vm760_vm11, %v738_v45 }
 0x468   :  { %1231 = vmatmul.msk.f32.vlgmr.msrb.gmra.mxu2 %vm760_vm11, %v738_v45  ;;  %1233 = vmatmul.msk.f32.vlgmr.msrb.gmra.mxu3 %vm760_vm11, %v738_v45 }
 0x469   :  { %1238 = vmatpush.msk.msrb.mxu2 %vm74_vm3, %v1030_v57  ;;  %1240 = vmatpush.msk.msrb.mxu3 %vm74_vm3, %v1031_v49 }
 0x46a   :  { %1236 = vmatpush.msk.msrb.mxu1 %vm74_vm3, %v1029_v59  ;;  %1234 = vmatpush.msk.msrb.mxu0 %vm74_vm3, %v1028_v60 }
 0x46f   :  { %946 = vmatmul.f32.vlgmr.msra.gmra.mxu0 %v922_v46  ;;  %966 = vmatmul.f32.vlgmr.msra.gmra.mxu1 %v923_v48 }
 0x470   :  { %986 = vmatmul.f32.vlgmr.msra.gmra.mxu2 %v924_v41  ;;  %1006 = vmatmul.f32.vlgmr.msra.gmra.mxu3 %v925_v47 }
 0x4e4   :  { %v789_v61 = vpop.f32.mrf.mxu0  ;;  %v809_v62 = vpop.f32.mrf.mxu1 }
 0x4e5   :  { %v790_v18 = vadd.f32 %v789_v61, %v743_v16  ;;  %v810_v22 = vadd.f32 %v809_v62, %v744_v17 }
 0x4eb   :  { %v829_v4 = vpop.f32.mrf.mxu2  ;;  %v849_v5 = vpop.f32.mrf.mxu3 }
 0x4ec   :  { %v947_v6 = vpop.f32.mrf.mxu0  ;;  %v967_v9 = vpop.f32.mrf.mxu1  ;;  %v830_v52 = vadd.f32 %v829_v4, %v745_v25  ;;  %v850_v32 = vadd.f32 %v849_v5, %v746_v27 }
 0x4ed   :  { %v948_v7 = vadd.f32 %v1257_v1, %v947_v6 }
 0x4ef   :  { %v968_v10 = vadd.f32 %v967_v9, %v948_v7 }
 0x4f3   :  { %v987_v2 = vpop.f32.mrf.mxu2  ;;  %v1007_v3 = vpop.f32.mrf.mxu3 }
 0x4f4   :  { %v988_v11 = vadd.f32 %v987_v2, %v968_v10 }
 0x4f6   :  { %v1008_v12 = vadd.f32 %v1007_v3, %v988_v11 }
 0x4f8   :  { %v1010_v13 = vmax.f32 %v1008_v12, 0.0 }
 0x4fa   :  { %1235 = vmatmul.msk.f32.vlgmr.msrb.gmra.mxu0 %vm760_vm11, %v1010_v13  ;;  %1237 = vmatmul.msk.f32.vlgmr.msrb.gmra.mxu1 %vm760_vm11, %v1010_v13 }
 0x4fb   :  { %1239 = vmatmul.msk.f32.vlgmr.msrb.gmra.mxu2 %vm760_vm11, %v1010_v13  ;;  %1241 = vmatmul.msk.f32.vlgmr.msrb.gmra.mxu3 %vm760_vm11, %v1010_v13 }
 0x577   :  { %v1060_v63 = vpop.f32.mrf.mxu0  ;;  %v1080_v21 = vpop.f32.mrf.mxu1 }
 0x578   :  { %v1061_v23 = vadd.f32 %v1060_v63, %v1015_v19  ;;  %v1081_v8 = vadd.f32 %v1080_v21, %v1016_v20 }
 0x57a   :  { %v1123_v24 = vmul.f32 %v1061_v23, %v790_v18  ;;  %v1124_v26 = vmul.f32 %v1081_v8, %v810_v22 }
 0x57c   :  { %v1242_v31 = vmul.f32 -1.442695, %v1123_v24  ;;  %v1243_v30 = vmul.f32 -1.442695, %v1124_v26 }
 0x57e   :  { %1258 = vpow2.f32 %v1242_v31  ;;  %v1100_v53 = vpop.f32.mrf.mxu2  ;;  %v1120_v55 = vpop.f32.mrf.mxu3 }
 0x57f   :  { %1260 = vpow2.f32 %v1243_v30  ;;  %v1101_v34 = vadd.f32 %v1100_v53, %v1017_v28  ;;  %v1121_v35 = vadd.f32 %v1120_v55, %v1018_v29 }
 0x581   :  { %v1125_v54 = vmul.f32 %v1101_v34, %v830_v52  ;;  %v1126_v33 = vmul.f32 %v1121_v35, %v850_v32 }
 0x583   :  { %v1244_v36 = vmul.f32 -1.442695, %v1125_v54  ;;  %v1245_v37 = vmul.f32 -1.442695, %v1126_v33 }
 0x584   :  { %v1259_v58 = vpop.eup %1258 }
 0x585   :  { %v1261_v38 = vpop.eup %1260  ;;  %v1139_v39 = vadd.f32 1.0, %v1259_v58  ;;  %1262 = vpow2.f32 %v1244_v36 }
 0x586   :  { %v1140_v51 = vadd.f32 1.0, %v1261_v38  ;;  %1264 = vpow2.f32 %v1245_v37 }
 0x587   :  { %1266 = vrcp.f32 %v1139_v39  ;;  %v1152_v50 = vand.u32 2147483647, %v1139_v39  ;;  %vm1148_vm14 = vweird.f32 %v1139_v39  ;;  %v1154_v1 = vand.u32 2147483648, %v1139_v39 }
 0x588   :  { %1268 = vrcp.f32 %v1140_v51  ;;  %v1167_v49 = vand.u32 2147483647, %v1140_v51  ;;  %v1169_v59 = vand.u32 2147483648, %v1140_v51  ;;  %vm1163_vm0 = vweird.f32 %v1140_v51 }
 0x589   :  { %vm2130_vm4 = vcmp.eq.f32.partialorder %v1152_v50, 8.507059e+37  ;;  %v1155_v13 = vor.u32 1.1754944e-38, %v1154_v1 }
 0x58a   :  { %vm1168_vm6 = vcmp.eq.f32.partialorder %v1167_v49, 8.507059e+37  ;;  %v1170_v10 = vor.u32 1.1754944e-38, %v1169_v59 }
 0x58b   :  { %v1263_v40 = vpop.eup %1262 }
 0x58c   :  { %v1265_v42 = vpop.eup %1264  ;;  %v1141_v43 = vadd.f32 1.0, %v1263_v40 }
 0x58d   :  { %v1267_v44 = vpop.eup %1266  ;;  %v1142_v45 = vadd.f32 1.0, %v1265_v42 }
 0x58e   :  { %v1269_v46 = vpop.eup %1268  ;;  %v1144_v48 = vmul.f32 %v1267_v44, %v1139_v39  ;;  %1270 = vrcp.f32 %v1141_v43  ;;  %vm1149_vm12 = vweird.f32 %v1267_v44  ;;  %v1182_v15 = vand.u32 2147483647, %v1141_v43 }
 0x58f   :  { %v1159_v41 = vmul.f32 %v1269_v46, %v1140_v51  ;;  %1272 = vrcp.f32 %v1142_v45  ;;  %vm1164_vm13 = vweird.f32 %v1269_v46  ;;  %vm2126_vm15 = vmor %vm1148_vm14, %vm1149_vm12  ;;  %v1184_v16 = vand.u32 2147483648, %v1141_v43 }
 0x590   :  { %v1145_v47 = vsub.f32 1.0, %v1144_v48  ;;  %vm1165_vm5 = vmor %vm1163_vm0, %vm1164_vm13  ;;  %vm1178_vm8 = vweird.f32 %v1141_v43  ;;  %v1197_v21 = vand.u32 2147483647, %v1142_v45  ;;  %v1199_v18 = vand.u32 2147483648, %v1142_v45 }
 0x591   :  { %v1160_v56 = vsub.f32 1.0, %v1159_v41  ;;  %v1185_v25 = vor.u32 1.1754944e-38, %v1184_v16  ;;  %vm1183_vm11 = vcmp.eq.f32.partialorder %v1182_v15, 8.507059e+37  ;;  %vm1193_vm12 = vweird.f32 %v1142_v45 }
 0x592   :  { %v1146_v57 = vmul.f32 %v1267_v44, %v1145_v47  ;;  %v1200_v28 = vor.u32 1.1754944e-38, %v1199_v18  ;;  %vm1198_vm14 = vcmp.eq.f32.partialorder %v1197_v21, 8.507059e+37 }
 0x593   :  { %v1161_v60 = vmul.f32 %v1269_v46, %v1160_v56 }
 0x594   :  { %v1271_v61 = vpop.eup %1270  ;;  %v1147_v62 = vadd.f32 %v1267_v44, %v1146_v57 }
 0x595   :  { %v1162_v5 = vadd.f32 %v1269_v46, %v1161_v60  ;;  %v1174_v6 = vmul.f32 %v1271_v61, %v1141_v43  ;;  %v1273_v7 = vpop.eup %1272  ;;  %vm1179_vm7 = vweird.f32 %v1271_v61 }
 0x596   :  { %v1151_v2 = vsel %vm2126_vm15, %v1267_v44, %v1147_v62  ;;  %v1189_v12 = vmul.f32 %v1273_v7, %v1142_v45  ;;  %vm1194_vm9 = vweird.f32 %v1273_v7  ;;  %vm1180_vm10 = vmor %vm1178_vm8, %vm1179_vm7 }
 0x597   :  { %v1166_v11 = vsel %vm1165_vm5, %v1269_v46, %v1162_v5  ;;  %v1175_v3 = vsub.f32 1.0, %v1174_v6  ;;  %v1156_v63 = vsel %vm2130_vm4, %v1155_v13, %v1151_v2  ;;  %vm1195_vm13 = vmor %vm1193_vm12, %vm1194_vm9 }
 0x598   :  { %v1171_v14 = vsel %vm1168_vm6, %v1170_v10, %v1166_v11  ;;  %v1190_v20 = vsub.f32 1.0, %v1189_v12 }
 0x599   :  { %v1207_v17 = vrot.slane %v1171_v14, 6  ;;  %v1176_v19 = vmul.f32 %v1271_v61, %v1175_v3 }
 0x59a   :  { %v1191_v8 = vmul.f32 %v1273_v7, %v1190_v20 }
 0x59b   :  { %v1210_v22 = vsel %vm70_vm1, %v1156_v63, %v1207_v17  ;;  %v1177_v23 = vadd.f32 %v1271_v61, %v1176_v19 }
 0x59c   :  { %v1192_v26 = vadd.f32 %v1273_v7, %v1191_v8 }
 0x59d   :  { %v1181_v24 = vsel %vm1180_vm10, %v1271_v61, %v1177_v23 }
 0x59e   :  { %v1186_v27 = vsel %vm1183_vm11, %v1185_v25, %v1181_v24  ;;  %v1196_v31 = vsel %vm1195_vm13, %v1273_v7, %v1192_v26 }
 0x59f   :  { %v1208_v29 = vrot.slane %v1186_v27, 4  ;;  %v1201_v30 = vsel %vm1198_vm14, %v1200_v28, %v1196_v31 }
 0x5a0   :  { %v1209_v52 = vrot.slane %v1201_v30, 2 }
 0x5a2   :  { %v1211_v53 = vsel %vm72_vm2, %v1208_v29, %v1209_v52 }
 0x5a3   :  { %v1212_v55 = vsel %vm74_vm3, %v1210_v22, %v1211_v53 }
 0x5a4   :  { %v1214_v32 = vmul.f32 %v1212_v55, %v1345_v0  ;;  %1216 = vst [vmem:[%s2158_s11] sm:$0xff] %v1212_v55 }
 0x5a6   :  { %1215 = vst [vmem:[%s2159_s10] sm:$0xff] %v1214_v32 }

</bundles_post_ra>
